<compile_context>
chip_gen: v7x
topology: tpu7x:2x2x1
jax: 0.10.0
libtpu: 0.0.40
codegen_flags: <defaults>
</compile_context>

<pallas_src>
import functools

import jax
import jax.numpy as jnp
from jax.experimental import pallas as pl
from jax.experimental.pallas import tpu as pltpu


def _round_up(n, m):
    return (n + m - 1) // m * m


# --------------------------------------------------------------------------
# Kernel
# --------------------------------------------------------------------------
def _make_rnn_kernel(num_layers: int, seq_len: int, batch_tile: int, hidden_pad: int):
    L, T, TB, Hp = num_layers, seq_len, batch_tile, hidden_pad
    assert T >= 1 and TB % 8 == 0

    def impl(x_ref, wih0_ref, wihr_ref, whh_ref, bias_ref, fcw_ref, fcb_ref,
             out_ref, gates_refs):
        # x_ref:    (T, TB, I)            time-major batch shard of the input
        # wih0_ref: (I, Hp)               layer-0 input weights (transposed, padded)
        # wihr_ref: (L-1, Hp, Hp) | None  layers 1..L-1 input weights
        # whh_ref:  (L, Hp, Hp)           hidden weights (transposed, padded)
        # bias_ref: (L, 1, Hp)            b_ih + b_hh combined, padded
        # fcw_ref:  (1, Hp)  fcb_ref: (1, 1)
        # out_ref:  (TB, 1)
        # gates_refs: 1 or 2 VMEM slabs of shape (T*TB, Hp) (ping-pong)
        I = x_ref.shape[-1]

        # ---- layer-0 input projection: ONE bulk MXU matmul over all T steps,
        #      bias folded in, materialized into slab 0 so the serial loop only
        #      carries the (TB, Hp) hidden state.
        xs = x_ref[...].reshape(T * TB, I)
        gates_refs[0][...] = (
            jnp.dot(xs, wih0_ref[...], preferred_element_type=jnp.float32)
            + bias_ref[0])

        h = None
        for layer in range(L):
            g_ref = gates_refs[layer % 2]
            last_layer = (layer == L - 1)
            w_hh = whh_ref[layer]                        # loaded once per layer
            if not last_layer:
                nxt_ref = gates_refs[(layer + 1) % 2]
                w_nxt = wihr_ref[layer]
                b_nxt = bias_ref[layer + 1]

            # T is small here -> static unroll.  For long sequences switch to
            # lax.fori_loop(..., unroll=True); the gates slabs already bound
            # the live range so that switch is mechanical.
            for t in range(T):
                g_t = g_ref[pl.ds(t * TB, TB), :]        # sublane-aligned (TB%8==0)
                if t == 0:
                    # peeled first step: h0 == 0, skip h @ W_hh entirely
                    h = jnp.tanh(g_t)
                else:
                    h = jnp.tanh(
                        g_t + jnp.dot(h.astype(w_hh.dtype), w_hh,
                                      preferred_element_type=jnp.float32))
                if not last_layer:
                    # Interleave the NEXT layer's input projection: independent
                    # of the recurrence, so it rides in MXU slack and replaces
                    # the bulk per-layer gates matmul for layers >= 1.
                    nxt_ref[pl.ds(t * TB, TB), :] = (
                        jnp.dot(h.astype(w_nxt.dtype), w_nxt,
                                preferred_element_type=jnp.float32) + b_nxt)

        # Final Linear(H, 1): VPU multiply + lane reduction (an (Hp,1) MXU
        # matmul would waste all but one output column).
        out_ref[...] = (jnp.sum(h * fcw_ref[...], axis=-1, keepdims=True)
                        + fcb_ref[...])

    if L > 1:
        def kernel(x_ref, wih0_ref, wihr_ref, whh_ref, bias_ref, fcw_ref,
                   fcb_ref, out_ref, g0, g1):
            impl(x_ref, wih0_ref, wihr_ref, whh_ref, bias_ref, fcw_ref,
                 fcb_ref, out_ref, (g0, g1))
    else:
        def kernel(x_ref, wih0_ref, whh_ref, bias_ref, fcw_ref,
                   fcb_ref, out_ref, g0):
            impl(x_ref, wih0_ref, None, whh_ref, bias_ref, fcw_ref,
                 fcb_ref, out_ref, (g0,))
    return kernel


# --------------------------------------------------------------------------
# Wrapper helpers
# --------------------------------------------------------------------------
def _num_tensorcores_per_chip() -> int:
    """v7x has 2 TensorCores/chip (shard the batch across them); v5e/v6e have 1,
    where splitting the batch only lengthens the latency-bound serial chain."""
    try:
        kind = jax.devices()[0].device_kind.lower()
    except Exception:
        return 1
    return 2 if "v7" in kind else 1


def _pick_tiling(B: int, T: int, Hp: int, L: int, n_cores: int):
    """Pad the batch so TB % 8 == 0 (plain, unmasked per-step stores), use one
    tile on 1-TC chips and exactly n_cores tiles on multi-TC chips, and cap the
    per-tile gates-slab footprint so huge batches still fit VMEM."""
    n_slabs = 2 if L > 1 else 1
    slab_bytes_per_batch_row = n_slabs * T * Hp * 4
    max_tb = max(8, ((16 << 20) // max(slab_bytes_per_batch_row, 1)) // 8 * 8)

    n_tiles = max(1, n_cores)
    while True:
        Bp = _round_up(B, 8 * n_tiles)
        tb = Bp // n_tiles
        if tb <= max_tb or tb <= 8:
            return Bp, tb
        n_tiles *= 2


def _resident_spec(arr):
    """Whole-array VMEM block with a constant block index (weights/bias).
    Single-buffered when the installed Pallas supports pipeline_mode — the
    index never changes, so double-buffering would only double weight VMEM."""
    n = arr.ndim
    idx = lambda i, _n=n: (0,) * _n
    if hasattr(pl, "Buffered"):
        try:
            return pl.BlockSpec(arr.shape, idx, pipeline_mode=pl.Buffered(1))
        except TypeError:
            pass
    return pl.BlockSpec(arr.shape, idx)


def _estimate_vmem_bytes(T, tb, I, Hp, weight_args, n_slabs, single_buffered):
    wmul = 1 if single_buffered else 2
    wbytes = sum(int(w.size) * w.dtype.itemsize for w in weight_args) * wmul
    xbytes = T * tb * I * 4 * 2            # double-buffered input block
    sbytes = n_slabs * T * tb * Hp * 4     # gates slabs
    obytes = tb * 1 * 4 * 2
    return wbytes + xbytes + sbytes + obytes


def _vmem_limit_bytes(est_bytes: int) -> int:
    try:
        kind = jax.devices()[0].device_kind.lower()
    except Exception:
        kind = ""
    cap = (48 << 20) if "v7" in kind else (96 << 20)   # leave HW headroom
    return int(min(cap, max(32 << 20, est_bytes + (8 << 20))))


# --------------------------------------------------------------------------
# Forward pass
# --------------------------------------------------------------------------
def rnn_forward_pallas(x, params, *, num_layers, hidden_size):
    B, T, I = x.shape
    L = num_layers
    Hp = params["w_hh"].shape[-1]

    n_cores = _num_tensorcores_per_chip()
    Bp, tb = _pick_tiling(B, T, Hp, L, n_cores)

    # Time-major + batch padded to the tile size: per-step activation accesses
    # inside the kernel are contiguous, sublane-aligned blocks (layout only).
    x_tm = jnp.transpose(x, (1, 0, 2))                   # (T, B, I)
    if Bp != B:
        x_tm = jnp.pad(x_tm, ((0, 0), (0, Bp - B), (0, 0)))

    kernel = _make_rnn_kernel(L, T, tb, Hp)

    weight_names = (["w_ih0", "w_ih_rest"] if L > 1 else ["w_ih0"]) + \
                   ["w_hh", "bias", "fc_w", "fc_b"]
    weight_args = [params[name] for name in weight_names]

    n_slabs = 2 if L > 1 else 1
    scratch = [pltpu.VMEM((T * tb, Hp), jnp.float32) for _ in range(n_slabs)]

    in_specs = [pl.BlockSpec((T, tb, I), lambda i: (0, i, 0))] + \
               [_resident_spec(w) for w in weight_args]

    est = _estimate_vmem_bytes(T, tb, I, Hp, weight_args, n_slabs,
                               single_buffered=hasattr(pl, "Buffered"))

    grid_spec = pltpu.PrefetchScalarGridSpec(
        num_scalar_prefetch=0,
        grid=(Bp // tb,),
        in_specs=in_specs,
        out_specs=pl.BlockSpec((tb, 1), lambda i: (i, 0)),
        scratch_shapes=scratch,
    )

    out = pl.pallas_call(
        kernel,
        out_shape=jax.ShapeDtypeStruct((Bp, 1), jnp.float32),
        grid_spec=grid_spec,
        compiler_params=pltpu.CompilerParams(
            dimension_semantics=("parallel",),
            vmem_limit_bytes=_vmem_limit_bytes(est)),
    )(x_tm, *weight_args)

    return out[:B]


# --------------------------------------------------------------------------
# Parameters
# --------------------------------------------------------------------------
def init_params(key, input_size, hidden_size, num_layers, *,
                recur_weight_dtype=jnp.float32):
    """PyTorch-style uniform(-1/sqrt(H), 1/sqrt(H)) init.

    Kernel-facing weights are pre-transposed to (in, out) and zero-padded so
    the hidden width is a lane-dense multiple of 128.  Padded lanes stay
    exactly zero through the recurrence (zero weight/bias padding, tanh(0)==0).

    `recur_weight_dtype=jnp.bfloat16` is an opt-in for v6e/v7x (lower per-step
    MXU latency, half the weight VMEM) — it loosens the achievable tolerance
    against an f32 reference, so the default stays float32."""
    H, I, L = hidden_size, input_size, num_layers
    Hp = _round_up(max(H, 128), 128)
    pad = Hp - H
    k = 1.0 / jnp.sqrt(jnp.float32(H))
    keys = jax.random.split(key, 4 * L + 2)
    ki = iter(keys)

    def u(kk, shape):
        return jax.random.uniform(kk, shape, jnp.float32, -k, k)

    w_ih = [u(next(ki), (H, I))] + [u(next(ki), (H, H)) for _ in range(L - 1)]
    w_hh = [u(next(ki), (H, H)) for _ in range(L)]
    b_ih = [u(next(ki), (H,)) for _ in range(L)]
    b_hh = [u(next(ki), (H,)) for _ in range(L)]
    fc_w = u(next(ki), (1, H))
    fc_b = u(next(ki), (1,))

    w_ih0_p = jnp.pad(w_ih[0].T, ((0, 0), (0, pad)))                     # (I, Hp)
    w_hh_p = jnp.stack([jnp.pad(w.T, ((0, pad), (0, pad))) for w in w_hh],
                       0).astype(recur_weight_dtype)                     # (L,Hp,Hp)
    bias_p = jnp.pad(jnp.stack(b_ih, 0) + jnp.stack(b_hh, 0),
                     ((0, 0), (0, pad)))[:, None, :]                     # (L,1,Hp)
    fc_w_p = jnp.pad(fc_w, ((0, 0), (0, pad)))                           # (1, Hp)
    fc_b_p = fc_b[None, :]                                               # (1, 1)

    params = {
        "w_ih0": w_ih0_p,
        "w_hh": w_hh_p,
        "bias": bias_p,
        "fc_w": fc_w_p,
        "fc_b": fc_b_p,
        # raw copies for the pure-JAX reference
        "_raw": (w_ih, w_hh, b_ih, b_hh, fc_w, fc_b),
    }
    if L > 1:
        params["w_ih_rest"] = jnp.stack(
            [jnp.pad(w.T, ((0, pad), (0, pad))) for w in w_ih[1:]],
            0).astype(recur_weight_dtype)                                # (L-1,Hp,Hp)
    return params


# --------------------------------------------------------------------------
# Pure-JAX reference (nn.RNN(batch_first=True) + nn.Linear)
# --------------------------------------------------------------------------
def rnn_forward_reference(x, params, *, num_layers, hidden_size):
    w_ih, w_hh, b_ih, b_hh, fc_w, fc_b = params["_raw"]
    B, T, _ = x.shape
    seq = x
    for l in range(num_layers):
        h = jnp.zeros((B, hidden_size), jnp.float32)
        outs = []
        for t in range(T):
            h = jnp.tanh(seq[:, t, :] @ w_ih[l].T + b_ih[l]
                         + h @ w_hh[l].T + b_hh[l])
            outs.append(h)
        seq = jnp.stack(outs, axis=1)
    return seq[:, -1, :] @ fc_w.T + fc_b


if __name__ == "__main__":
    B, T, I, H, L = 2, 8, 4, 32, 2

    key = jax.random.PRNGKey(0)
    k_params, k_x = jax.random.split(key)
    params = init_params(k_params, I, H, L)
    x = jax.random.normal(k_x, (B, T, I), jnp.float32)

    kernel_params = {k: v for k, v in params.items() if k != "_raw"}
    fwd = jax.jit(functools.partial(rnn_forward_pallas,
                                    num_layers=L, hidden_size=H))
    out = jax.block_until_ready(fwd(x, kernel_params))

    ref = rnn_forward_reference(x, params, num_layers=L, hidden_size=H)
    assert out.shape == (B, 1)
    assert jnp.allclose(out, ref, atol=1e-5, rtol=1e-5), (out, ref)

    print("KERNEL_OK")
</pallas_src>

<mosaic_0001>
module attributes {stable_mosaic.version = 11 : i64} {
  func.func @kernel(%arg0: i32, %arg1: memref<8x8x4xf32, #tpu.memory_space<vmem>>, %arg2: memref<4x128xf32, #tpu.memory_space<vmem>>, %arg3: memref<1x128x128xf32, #tpu.memory_space<vmem>>, %arg4: memref<2x128x128xf32, #tpu.memory_space<vmem>>, %arg5: memref<2x1x128xf32, #tpu.memory_space<vmem>>, %arg6: memref<1x128xf32, #tpu.memory_space<vmem>>, %arg7: memref<1x1xf32, #tpu.memory_space<vmem>>, %arg8: memref<8x1xf32, #tpu.memory_space<vmem>>, %arg9: memref<64x128xf32, #tpu.memory_space<vmem>>, %arg10: memref<64x128xf32, #tpu.memory_space<vmem>>) attributes {dimension_semantics = [#tpu.dimension_semantics<parallel>], iteration_bounds = array<i64: 1>, scalar_prefetch = 0 : i64, scratch_operands = 2 : i64, tpu.core_type = #tpu.core_type<tc>, window_params = [{transform_indices = @transform_0, window_bounds = array<i64: 8, 8, 4>}, {pipeline_mode = #tpu.pipeline_mode<synchronous>, transform_indices = @transform_1, window_bounds = array<i64: 4, 128>}, {pipeline_mode = #tpu.pipeline_mode<synchronous>, transform_indices = @transform_2, window_bounds = array<i64: 1, 128, 128>}, {pipeline_mode = #tpu.pipeline_mode<synchronous>, transform_indices = @transform_3, window_bounds = array<i64: 2, 128, 128>}, {pipeline_mode = #tpu.pipeline_mode<synchronous>, transform_indices = @transform_4, window_bounds = array<i64: 2, 1, 128>}, {pipeline_mode = #tpu.pipeline_mode<synchronous>, transform_indices = @transform_5, window_bounds = array<i64: 1, 128>}, {pipeline_mode = #tpu.pipeline_mode<synchronous>, transform_indices = @transform_6, window_bounds = array<i64: 1, 1>}, {transform_indices = @transform_7, window_bounds = array<i64: 8, 1>}]} {
    %c0 = arith.constant 0 : index
    %c0_0 = arith.constant 0 : index
    %c0_1 = arith.constant 0 : index
    %0 = vector.load %arg1[%c0, %c0_0, %c0_1] : memref<8x8x4xf32, #tpu.memory_space<vmem>>, vector<8x8x4xf32>
    %1 = vector.shape_cast %0 : vector<8x8x4xf32> to vector<64x4xf32>
    %c0_2 = arith.constant 0 : index
    %c0_3 = arith.constant 0 : index
    %2 = vector.load %arg2[%c0_2, %c0_3] : memref<4x128xf32, #tpu.memory_space<vmem>>, vector<4x128xf32>
    %cst = arith.constant dense<0.000000e+00> : vector<64x128xf32>
    %3 = tpu.matmul %1, %2, %cst {dimension_numbers = #tpu.dot_dimension_numbers<[1], [0], [0], [1], [0, 0, 1, 1], [], []>} : vector<64x4xf32>, vector<4x128xf32>, vector<64x128xf32> -> vector<64x128xf32>
    %c0_4 = arith.constant 0 : index
    %c0_5 = arith.constant 0 : index
    %c0_6 = arith.constant 0 : index
    %4 = vector.load %arg5[%c0_4, %c0_5, %c0_6] : memref<2x1x128xf32, #tpu.memory_space<vmem>>, vector<1x1x128xf32>
    %5 = vector.shape_cast %4 : vector<1x1x128xf32> to vector<1x128xf32>
    %6 = vector.broadcast %5 : vector<1x128xf32> to vector<64x128xf32>
    %7 = arith.addf %3, %6 : vector<64x128xf32>
    %c0_7 = arith.constant 0 : index
    %c0_8 = arith.constant 0 : index
    %8 = vector.load %arg9[%c0_7, %c0_8] : memref<64x128xf32, #tpu.memory_space<vmem>>, vector<64x128xf32>
    tpu.vector_store %arg9[%c0_7, %c0_8], %7 {strides = array<i32>} : memref<64x128xf32, #tpu.memory_space<vmem>>, vector<64x128xf32>,
    %c0_9 = arith.constant 0 : index
    %c0_10 = arith.constant 0 : index
    %c0_11 = arith.constant 0 : index
    %9 = vector.load %arg4[%c0_9, %c0_10, %c0_11] : memref<2x128x128xf32, #tpu.memory_space<vmem>>, vector<1x128x128xf32>
    %10 = vector.shape_cast %9 : vector<1x128x128xf32> to vector<128x128xf32>
    %c0_12 = arith.constant 0 : index
    %c0_13 = arith.constant 0 : index
    %c0_14 = arith.constant 0 : index
    %11 = vector.load %arg3[%c0_12, %c0_13, %c0_14] : memref<1x128x128xf32, #tpu.memory_space<vmem>>, vector<1x128x128xf32>
    %12 = vector.shape_cast %11 : vector<1x128x128xf32> to vector<128x128xf32>
    %c1 = arith.constant 1 : index
    %c0_15 = arith.constant 0 : index
    %c0_16 = arith.constant 0 : index
    %13 = vector.load %arg5[%c1, %c0_15, %c0_16] : memref<2x1x128xf32, #tpu.memory_space<vmem>>, vector<1x1x128xf32>
    %14 = vector.shape_cast %13 : vector<1x1x128xf32> to vector<1x128xf32>
    %c0_17 = arith.constant 0 : index
    %c0_18 = arith.constant 0 : index
    %15 = vector.load %arg9[%c0_17, %c0_18] : memref<64x128xf32, #tpu.memory_space<vmem>>, vector<8x128xf32>
    %16 = math.tanh %15 : vector<8x128xf32>
    %cst_19 = arith.constant dense<0.000000e+00> : vector<8x128xf32>
    %17 = tpu.matmul %16, %12, %cst_19 {dimension_numbers = #tpu.dot_dimension_numbers<[1], [0], [0], [1], [0, 0, 1, 1], [], []>} : vector<8x128xf32>, vector<128x128xf32>, vector<8x128xf32> -> vector<8x128xf32>
    %18 = vector.broadcast %14 : vector<1x128xf32> to vector<8x128xf32>
    %19 = arith.addf %17, %18 : vector<8x128xf32>
    %c0_20 = arith.constant 0 : index
    %c0_21 = arith.constant 0 : index
    %20 = vector.load %arg10[%c0_20, %c0_21] : memref<64x128xf32, #tpu.memory_space<vmem>>, vector<8x128xf32>
    tpu.vector_store %arg10[%c0_20, %c0_21], %19 {strides = array<i32>} : memref<64x128xf32, #tpu.memory_space<vmem>>, vector<8x128xf32>,
    %c8 = arith.constant 8 : index
    %c0_22 = arith.constant 0 : index
    %21 = vector.load %arg9[%c8, %c0_22] : memref<64x128xf32, #tpu.memory_space<vmem>>, vector<8x128xf32>
    %cst_23 = arith.constant dense<0.000000e+00> : vector<8x128xf32>
    %22 = tpu.matmul %16, %10, %cst_23 {dimension_numbers = #tpu.dot_dimension_numbers<[1], [0], [0], [1], [0, 0, 1, 1], [], []>} : vector<8x128xf32>, vector<128x128xf32>, vector<8x128xf32> -> vector<8x128xf32>
    %23 = arith.addf %21, %22 : vector<8x128xf32>
    %24 = math.tanh %23 : vector<8x128xf32>
    %cst_24 = arith.constant dense<0.000000e+00> : vector<8x128xf32>
    %25 = tpu.matmul %24, %12, %cst_24 {dimension_numbers = #tpu.dot_dimension_numbers<[1], [0], [0], [1], [0, 0, 1, 1], [], []>} : vector<8x128xf32>, vector<128x128xf32>, vector<8x128xf32> -> vector<8x128xf32>
    %26 = vector.broadcast %14 : vector<1x128xf32> to vector<8x128xf32>
    %27 = arith.addf %25, %26 : vector<8x128xf32>
    %c8_25 = arith.constant 8 : index
    %c0_26 = arith.constant 0 : index
    %28 = vector.load %arg10[%c8_25, %c0_26] : memref<64x128xf32, #tpu.memory_space<vmem>>, vector<8x128xf32>
    tpu.vector_store %arg10[%c8_25, %c0_26], %27 {strides = array<i32>} : memref<64x128xf32, #tpu.memory_space<vmem>>, vector<8x128xf32>,
    %c16 = arith.constant 16 : index
    %c0_27 = arith.constant 0 : index
    %29 = vector.load %arg9[%c16, %c0_27] : memref<64x128xf32, #tpu.memory_space<vmem>>, vector<8x128xf32>
    %cst_28 = arith.constant dense<0.000000e+00> : vector<8x128xf32>
    %30 = tpu.matmul %24, %10, %cst_28 {dimension_numbers = #tpu.dot_dimension_numbers<[1], [0], [0], [1], [0, 0, 1, 1], [], []>} : vector<8x128xf32>, vector<128x128xf32>, vector<8x128xf32> -> vector<8x128xf32>
    %31 = arith.addf %29, %30 : vector<8x128xf32>
    %32 = math.tanh %31 : vector<8x128xf32>
    %cst_29 = arith.constant dense<0.000000e+00> : vector<8x128xf32>
    %33 = tpu.matmul %32, %12, %cst_29 {dimension_numbers = #tpu.dot_dimension_numbers<[1], [0], [0], [1], [0, 0, 1, 1], [], []>} : vector<8x128xf32>, vector<128x128xf32>, vector<8x128xf32> -> vector<8x128xf32>
    %34 = vector.broadcast %14 : vector<1x128xf32> to vector<8x128xf32>
    %35 = arith.addf %33, %34 : vector<8x128xf32>
    %c16_30 = arith.constant 16 : index
    %c0_31 = arith.constant 0 : index
    %36 = vector.load %arg10[%c16_30, %c0_31] : memref<64x128xf32, #tpu.memory_space<vmem>>, vector<8x128xf32>
    tpu.vector_store %arg10[%c16_30, %c0_31], %35 {strides = array<i32>} : memref<64x128xf32, #tpu.memory_space<vmem>>, vector<8x128xf32>,
    %c24 = arith.constant 24 : index
    %c0_32 = arith.constant 0 : index
    %37 = vector.load %arg9[%c24, %c0_32] : memref<64x128xf32, #tpu.memory_space<vmem>>, vector<8x128xf32>
    %cst_33 = arith.constant dense<0.000000e+00> : vector<8x128xf32>
    %38 = tpu.matmul %32, %10, %cst_33 {dimension_numbers = #tpu.dot_dimension_numbers<[1], [0], [0], [1], [0, 0, 1, 1], [], []>} : vector<8x128xf32>, vector<128x128xf32>, vector<8x128xf32> -> vector<8x128xf32>
    %39 = arith.addf %37, %38 : vector<8x128xf32>
    %40 = math.tanh %39 : vector<8x128xf32>
    %cst_34 = arith.constant dense<0.000000e+00> : vector<8x128xf32>
    %41 = tpu.matmul %40, %12, %cst_34 {dimension_numbers = #tpu.dot_dimension_numbers<[1], [0], [0], [1], [0, 0, 1, 1], [], []>} : vector<8x128xf32>, vector<128x128xf32>, vector<8x128xf32> -> vector<8x128xf32>
    %42 = vector.broadcast %14 : vector<1x128xf32> to vector<8x128xf32>
    %43 = arith.addf %41, %42 : vector<8x128xf32>
    %c24_35 = arith.constant 24 : index
    %c0_36 = arith.constant 0 : index
    %44 = vector.load %arg10[%c24_35, %c0_36] : memref<64x128xf32, #tpu.memory_space<vmem>>, vector<8x128xf32>
    tpu.vector_store %arg10[%c24_35, %c0_36], %43 {strides = array<i32>} : memref<64x128xf32, #tpu.memory_space<vmem>>, vector<8x128xf32>,
    %c32 = arith.constant 32 : index
    %c0_37 = arith.constant 0 : index
    %45 = vector.load %arg9[%c32, %c0_37] : memref<64x128xf32, #tpu.memory_space<vmem>>, vector<8x128xf32>
    %cst_38 = arith.constant dense<0.000000e+00> : vector<8x128xf32>
    %46 = tpu.matmul %40, %10, %cst_38 {dimension_numbers = #tpu.dot_dimension_numbers<[1], [0], [0], [1], [0, 0, 1, 1], [], []>} : vector<8x128xf32>, vector<128x128xf32>, vector<8x128xf32> -> vector<8x128xf32>
    %47 = arith.addf %45, %46 : vector<8x128xf32>
    %48 = math.tanh %47 : vector<8x128xf32>
    %cst_39 = arith.constant dense<0.000000e+00> : vector<8x128xf32>
    %49 = tpu.matmul %48, %12, %cst_39 {dimension_numbers = #tpu.dot_dimension_numbers<[1], [0], [0], [1], [0, 0, 1, 1], [], []>} : vector<8x128xf32>, vector<128x128xf32>, vector<8x128xf32> -> vector<8x128xf32>
    %50 = vector.broadcast %14 : vector<1x128xf32> to vector<8x128xf32>
    %51 = arith.addf %49, %50 : vector<8x128xf32>
    %c32_40 = arith.constant 32 : index
    %c0_41 = arith.constant 0 : index
    %52 = vector.load %arg10[%c32_40, %c0_41] : memref<64x128xf32, #tpu.memory_space<vmem>>, vector<8x128xf32>
    tpu.vector_store %arg10[%c32_40, %c0_41], %51 {strides = array<i32>} : memref<64x128xf32, #tpu.memory_space<vmem>>, vector<8x128xf32>,
    %c40 = arith.constant 40 : index
    %c0_42 = arith.constant 0 : index
    %53 = vector.load %arg9[%c40, %c0_42] : memref<64x128xf32, #tpu.memory_space<vmem>>, vector<8x128xf32>
    %cst_43 = arith.constant dense<0.000000e+00> : vector<8x128xf32>
    %54 = tpu.matmul %48, %10, %cst_43 {dimension_numbers = #tpu.dot_dimension_numbers<[1], [0], [0], [1], [0, 0, 1, 1], [], []>} : vector<8x128xf32>, vector<128x128xf32>, vector<8x128xf32> -> vector<8x128xf32>
    %55 = arith.addf %53, %54 : vector<8x128xf32>
    %56 = math.tanh %55 : vector<8x128xf32>
    %cst_44 = arith.constant dense<0.000000e+00> : vector<8x128xf32>
    %57 = tpu.matmul %56, %12, %cst_44 {dimension_numbers = #tpu.dot_dimension_numbers<[1], [0], [0], [1], [0, 0, 1, 1], [], []>} : vector<8x128xf32>, vector<128x128xf32>, vector<8x128xf32> -> vector<8x128xf32>
    %58 = vector.broadcast %14 : vector<1x128xf32> to vector<8x128xf32>
    %59 = arith.addf %57, %58 : vector<8x128xf32>
    %c40_45 = arith.constant 40 : index
    %c0_46 = arith.constant 0 : index
    %60 = vector.load %arg10[%c40_45, %c0_46] : memref<64x128xf32, #tpu.memory_space<vmem>>, vector<8x128xf32>
    tpu.vector_store %arg10[%c40_45, %c0_46], %59 {strides = array<i32>} : memref<64x128xf32, #tpu.memory_space<vmem>>, vector<8x128xf32>,
    %c48 = arith.constant 48 : index
    %c0_47 = arith.constant 0 : index
    %61 = vector.load %arg9[%c48, %c0_47] : memref<64x128xf32, #tpu.memory_space<vmem>>, vector<8x128xf32>
    %cst_48 = arith.constant dense<0.000000e+00> : vector<8x128xf32>
    %62 = tpu.matmul %56, %10, %cst_48 {dimension_numbers = #tpu.dot_dimension_numbers<[1], [0], [0], [1], [0, 0, 1, 1], [], []>} : vector<8x128xf32>, vector<128x128xf32>, vector<8x128xf32> -> vector<8x128xf32>
    %63 = arith.addf %61, %62 : vector<8x128xf32>
    %64 = math.tanh %63 : vector<8x128xf32>
    %cst_49 = arith.constant dense<0.000000e+00> : vector<8x128xf32>
    %65 = tpu.matmul %64, %12, %cst_49 {dimension_numbers = #tpu.dot_dimension_numbers<[1], [0], [0], [1], [0, 0, 1, 1], [], []>} : vector<8x128xf32>, vector<128x128xf32>, vector<8x128xf32> -> vector<8x128xf32>
    %66 = vector.broadcast %14 : vector<1x128xf32> to vector<8x128xf32>
    %67 = arith.addf %65, %66 : vector<8x128xf32>
    %c48_50 = arith.constant 48 : index
    %c0_51 = arith.constant 0 : index
    %68 = vector.load %arg10[%c48_50, %c0_51] : memref<64x128xf32, #tpu.memory_space<vmem>>, vector<8x128xf32>
    tpu.vector_store %arg10[%c48_50, %c0_51], %67 {strides = array<i32>} : memref<64x128xf32, #tpu.memory_space<vmem>>, vector<8x128xf32>,
    %c56 = arith.constant 56 : index
    %c0_52 = arith.constant 0 : index
    %69 = vector.load %arg9[%c56, %c0_52] : memref<64x128xf32, #tpu.memory_space<vmem>>, vector<8x128xf32>
    %cst_53 = arith.constant dense<0.000000e+00> : vector<8x128xf32>
    %70 = tpu.matmul %64, %10, %cst_53 {dimension_numbers = #tpu.dot_dimension_numbers<[1], [0], [0], [1], [0, 0, 1, 1], [], []>} : vector<8x128xf32>, vector<128x128xf32>, vector<8x128xf32> -> vector<8x128xf32>
    %71 = arith.addf %69, %70 : vector<8x128xf32>
    %72 = math.tanh %71 : vector<8x128xf32>
    %cst_54 = arith.constant dense<0.000000e+00> : vector<8x128xf32>
    %73 = tpu.matmul %72, %12, %cst_54 {dimension_numbers = #tpu.dot_dimension_numbers<[1], [0], [0], [1], [0, 0, 1, 1], [], []>} : vector<8x128xf32>, vector<128x128xf32>, vector<8x128xf32> -> vector<8x128xf32>
    %74 = vector.broadcast %14 : vector<1x128xf32> to vector<8x128xf32>
    %75 = arith.addf %73, %74 : vector<8x128xf32>
    %c56_55 = arith.constant 56 : index
    %c0_56 = arith.constant 0 : index
    %76 = vector.load %arg10[%c56_55, %c0_56] : memref<64x128xf32, #tpu.memory_space<vmem>>, vector<8x128xf32>
    tpu.vector_store %arg10[%c56_55, %c0_56], %75 {strides = array<i32>} : memref<64x128xf32, #tpu.memory_space<vmem>>, vector<8x128xf32>,
    %c1_57 = arith.constant 1 : index
    %c0_58 = arith.constant 0 : index
    %c0_59 = arith.constant 0 : index
    %77 = vector.load %arg4[%c1_57, %c0_58, %c0_59] : memref<2x128x128xf32, #tpu.memory_space<vmem>>, vector<1x128x128xf32>
    %78 = vector.shape_cast %77 : vector<1x128x128xf32> to vector<128x128xf32>
    %c0_60 = arith.constant 0 : index
    %c0_61 = arith.constant 0 : index
    %79 = vector.load %arg10[%c0_60, %c0_61] : memref<64x128xf32, #tpu.memory_space<vmem>>, vector<8x128xf32>
    %80 = math.tanh %79 : vector<8x128xf32>
    %c8_62 = arith.constant 8 : index
    %c0_63 = arith.constant 0 : index
    %81 = vector.load %arg10[%c8_62, %c0_63] : memref<64x128xf32, #tpu.memory_space<vmem>>, vector<8x128xf32>
    %cst_64 = arith.constant dense<0.000000e+00> : vector<8x128xf32>
    %82 = tpu.matmul %80, %78, %cst_64 {dimension_numbers = #tpu.dot_dimension_numbers<[1], [0], [0], [1], [0, 0, 1, 1], [], []>} : vector<8x128xf32>, vector<128x128xf32>, vector<8x128xf32> -> vector<8x128xf32>
    %83 = arith.addf %81, %82 : vector<8x128xf32>
    %84 = math.tanh %83 : vector<8x128xf32>
    %c16_65 = arith.constant 16 : index
    %c0_66 = arith.constant 0 : index
    %85 = vector.load %arg10[%c16_65, %c0_66] : memref<64x128xf32, #tpu.memory_space<vmem>>, vector<8x128xf32>
    %cst_67 = arith.constant dense<0.000000e+00> : vector<8x128xf32>
    %86 = tpu.matmul %84, %78, %cst_67 {dimension_numbers = #tpu.dot_dimension_numbers<[1], [0], [0], [1], [0, 0, 1, 1], [], []>} : vector<8x128xf32>, vector<128x128xf32>, vector<8x128xf32> -> vector<8x128xf32>
    %87 = arith.addf %85, %86 : vector<8x128xf32>
    %88 = math.tanh %87 : vector<8x128xf32>
    %c24_68 = arith.constant 24 : index
    %c0_69 = arith.constant 0 : index
    %89 = vector.load %arg10[%c24_68, %c0_69] : memref<64x128xf32, #tpu.memory_space<vmem>>, vector<8x128xf32>
    %cst_70 = arith.constant dense<0.000000e+00> : vector<8x128xf32>
    %90 = tpu.matmul %88, %78, %cst_70 {dimension_numbers = #tpu.dot_dimension_numbers<[1], [0], [0], [1], [0, 0, 1, 1], [], []>} : vector<8x128xf32>, vector<128x128xf32>, vector<8x128xf32> -> vector<8x128xf32>
    %91 = arith.addf %89, %90 : vector<8x128xf32>
    %92 = math.tanh %91 : vector<8x128xf32>
    %c32_71 = arith.constant 32 : index
    %c0_72 = arith.constant 0 : index
    %93 = vector.load %arg10[%c32_71, %c0_72] : memref<64x128xf32, #tpu.memory_space<vmem>>, vector<8x128xf32>
    %cst_73 = arith.constant dense<0.000000e+00> : vector<8x128xf32>
    %94 = tpu.matmul %92, %78, %cst_73 {dimension_numbers = #tpu.dot_dimension_numbers<[1], [0], [0], [1], [0, 0, 1, 1], [], []>} : vector<8x128xf32>, vector<128x128xf32>, vector<8x128xf32> -> vector<8x128xf32>
    %95 = arith.addf %93, %94 : vector<8x128xf32>
    %96 = math.tanh %95 : vector<8x128xf32>
    %c40_74 = arith.constant 40 : index
    %c0_75 = arith.constant 0 : index
    %97 = vector.load %arg10[%c40_74, %c0_75] : memref<64x128xf32, #tpu.memory_space<vmem>>, vector<8x128xf32>
    %cst_76 = arith.constant dense<0.000000e+00> : vector<8x128xf32>
    %98 = tpu.matmul %96, %78, %cst_76 {dimension_numbers = #tpu.dot_dimension_numbers<[1], [0], [0], [1], [0, 0, 1, 1], [], []>} : vector<8x128xf32>, vector<128x128xf32>, vector<8x128xf32> -> vector<8x128xf32>
    %99 = arith.addf %97, %98 : vector<8x128xf32>
    %100 = math.tanh %99 : vector<8x128xf32>
    %c48_77 = arith.constant 48 : index
    %c0_78 = arith.constant 0 : index
    %101 = vector.load %arg10[%c48_77, %c0_78] : memref<64x128xf32, #tpu.memory_space<vmem>>, vector<8x128xf32>
    %cst_79 = arith.constant dense<0.000000e+00> : vector<8x128xf32>
    %102 = tpu.matmul %100, %78, %cst_79 {dimension_numbers = #tpu.dot_dimension_numbers<[1], [0], [0], [1], [0, 0, 1, 1], [], []>} : vector<8x128xf32>, vector<128x128xf32>, vector<8x128xf32> -> vector<8x128xf32>
    %103 = arith.addf %101, %102 : vector<8x128xf32>
    %104 = math.tanh %103 : vector<8x128xf32>
    %c56_80 = arith.constant 56 : index
    %c0_81 = arith.constant 0 : index
    %105 = vector.load %arg10[%c56_80, %c0_81] : memref<64x128xf32, #tpu.memory_space<vmem>>, vector<8x128xf32>
    %cst_82 = arith.constant dense<0.000000e+00> : vector<8x128xf32>
    %106 = tpu.matmul %104, %78, %cst_82 {dimension_numbers = #tpu.dot_dimension_numbers<[1], [0], [0], [1], [0, 0, 1, 1], [], []>} : vector<8x128xf32>, vector<128x128xf32>, vector<8x128xf32> -> vector<8x128xf32>
    %107 = arith.addf %105, %106 : vector<8x128xf32>
    %108 = math.tanh %107 : vector<8x128xf32>
    %c0_83 = arith.constant 0 : index
    %c0_84 = arith.constant 0 : index
    %109 = vector.load %arg6[%c0_83, %c0_84] : memref<1x128xf32, #tpu.memory_space<vmem>>, vector<1x128xf32>
    %110 = vector.broadcast %109 : vector<1x128xf32> to vector<8x128xf32>
    %111 = arith.mulf %108, %110 : vector<8x128xf32>
    %cst_85 = arith.constant dense<0.000000e+00> : vector<8xf32>
    %112 = vector.multi_reduction <add>, %111, %cst_85 [1] : vector<8x128xf32> to vector<8xf32>
    %113 = vector.shape_cast %112 : vector<8xf32> to vector<8x1xf32>
    %c0_86 = arith.constant 0 : index
    %c0_87 = arith.constant 0 : index
    %114 = vector.load %arg7[%c0_86, %c0_87] : memref<1x1xf32, #tpu.memory_space<vmem>>, vector<1x1xf32>
    %115 = vector.broadcast %114 : vector<1x1xf32> to vector<8x1xf32>
    %116 = arith.addf %113, %115 : vector<8x1xf32>
    %c0_88 = arith.constant 0 : index
    %c0_89 = arith.constant 0 : index
    %117 = vector.load %arg8[%c0_88, %c0_89] : memref<8x1xf32, #tpu.memory_space<vmem>>, vector<8x1xf32>
    tpu.vector_store %arg8[%c0_88, %c0_89], %116 {strides = array<i32>} : memref<8x1xf32, #tpu.memory_space<vmem>>, vector<8x1xf32>,
    return
  }
  func.func @transform_0(%arg0: i32) -> (i32, i32, i32) {
    %c0_i32 = arith.constant 0 : i32
    %c0_i32_0 = arith.constant 0 : i32
    %c0_i32_1 = arith.constant 0 : i32
    return %c0_i32, %arg0, %c0_i32_0 : i32, i32, i32
  }
  func.func @transform_1(%arg0: i32) -> (i32, i32) {
    %c0_i32 = arith.constant 0 : i32
    %c0_i32_0 = arith.constant 0 : i32
    %c0_i32_1 = arith.constant 0 : i32
    return %c0_i32, %c0_i32_0 : i32, i32
  }
  func.func @transform_2(%arg0: i32) -> (i32, i32, i32) {
    %c0_i32 = arith.constant 0 : i32
    %c0_i32_0 = arith.constant 0 : i32
    %c0_i32_1 = arith.constant 0 : i32
    %c0_i32_2 = arith.constant 0 : i32
    return %c0_i32, %c0_i32_0, %c0_i32_1 : i32, i32, i32
  }
  func.func @transform_3(%arg0: i32) -> (i32, i32, i32) {
    %c0_i32 = arith.constant 0 : i32
    %c0_i32_0 = arith.constant 0 : i32
    %c0_i32_1 = arith.constant 0 : i32
    %c0_i32_2 = arith.constant 0 : i32
    return %c0_i32, %c0_i32_0, %c0_i32_1 : i32, i32, i32
  }
  func.func @transform_4(%arg0: i32) -> (i32, i32, i32) {
    %c0_i32 = arith.constant 0 : i32
    %c0_i32_0 = arith.constant 0 : i32
    %c0_i32_1 = arith.constant 0 : i32
    %c0_i32_2 = arith.constant 0 : i32
    return %c0_i32, %c0_i32_0, %c0_i32_1 : i32, i32, i32
  }
  func.func @transform_5(%arg0: i32) -> (i32, i32) {
    %c0_i32 = arith.constant 0 : i32
    %c0_i32_0 = arith.constant 0 : i32
    %c0_i32_1 = arith.constant 0 : i32
    return %c0_i32, %c0_i32_0 : i32, i32
  }
  func.func @transform_6(%arg0: i32) -> (i32, i32) {
    %c0_i32 = arith.constant 0 : i32
    %c0_i32_0 = arith.constant 0 : i32
    %c0_i32_1 = arith.constant 0 : i32
    return %c0_i32, %c0_i32_0 : i32, i32
  }
  func.func @transform_7(%arg0: i32) -> (i32, i32) {
    %c0_i32 = arith.constant 0 : i32
    %c0_i32_0 = arith.constant 0 : i32
    return %arg0, %c0_i32 : i32, i32
  }
}

</mosaic_0001>

<bundles_post_ra>
// kernel: rnn_forward_pallas.1
= control target key start
LH: loop header
LB: loop body
LE: loop exit
PB: predicated region body
PF: predicated region fallthrough
CT: control target
= control target key end

     0   :  { %s4320_s0 = inlined_call_operand.vmem [shape: f32[8,8,4], index: 0, kind: input, shape index: {}]   ;;  %s4321_s1 = inlined_call_operand.vmem [shape: f32[4,128], index: 1, kind: input, shape index: {}]   ;;  %s4322_s2 = inlined_call_operand.hbm [shape: f32[1,128,128], index: 2, kind: input, shape index: {}]   ;;  %s4323_s3 = inlined_call_operand.hbm [shape: f32[2,128,128], index: 3, kind: input, shape index: {}]   ;;  %s4324_s4 = inlined_call_operand.vmem [shape: f32[2,1,128], index: 4, kind: input, shape index: {}]   ;;  %s4325_s5 = inlined_call_operand.vmem [shape: f32[1,128], index: 5, kind: input, shape index: {}]   ;;  %s4326_s6 = inlined_call_operand.<no memory space> [shape: f32[1,1], index: 6, kind: input, shape index: {}]   ;;  %s4327_s7 = inlined_call_operand.vmem [shape: f32[8,1], index: 7, kind: output, shape index: {}]  }
   0x1   :  { %v12_v0 = vstv %s4326_s6 }
   0x2   :  { %13 = vst [vmem:[#allocation4] sm:$0x1] %v12_v0 }
   0x3   :  { %14 = vsyncpa [#allocation6], 0 }
   0x4   :  { %15 = vsyncpa [#allocation8], 0  ;;  %s3705_s26 = smov [#allocation5]   ;;  %s3657_s30 = scalar_lea.hbm %s4322_s2, 2048 }
   0x5   :  { %s25_s27 = sshll.u32 %s3705_s26, 4  ;;  %p3658_p0 = scmp.ne.s32.totalorder %s4322_s2, %s3657_s30  ;;  %s26_s27 = int_to_ptr.vmem [resolvable:$true] %s25_s27 }
   0x6   :  { %p3661_p1 = scmp.lt.u32.totalorder %s3657_s30, %s4322_s2 }
   0x8   :  { %p3663_p2 = pnand %p3661_p1, %p3658_p0 }
   0xa   :  { %3666 = shalt.err (!%p3663_p2)
}
   0xb   :  { %s3667_s6 = scalar_lea.vmem %s26_s27, 2048  ;;  %p3672_p4 = scmp.lt.s32.totalorder %s26_s27, %s26_s27 }
   0xc   :  { %p3668_p3 = scmp.ne.s32.totalorder %s26_s27, %s3667_s6  ;;  %p3673_p5 = scmp.lt.s32.totalorder %s3667_s6, %s3667_s6 }
   0xe   :  { %p3674_p6 = por %p3673_p5, %p3672_p4 }
  0x10   :  { %p3675_p7 = pnand %p3674_p6, %p3668_p3 }
  0x12   :  { %3678 = shalt.err (!%p3675_p7)
}
  0x13   :  { %s3706_s12 = smov 128   ;;  %s3707_s13 = smov 8  }
  0x14   :  { %31 = dma.hbm_to_vmem [thread:$0]  %s4322_s2, 2048, %s26_s27, [#allocation6], %s3706_s12, %s3706_s12, %s3707_s13  }
  0x15   :  { %s3708_s16 = smov [#allocation7]   ;;  %s3679_s20 = scalar_lea.hbm %s4323_s3, 4096 }
  0x16   :  { %s37_s17 = sshll.u32 %s3708_s16, 4  ;;  %p3680_p8 = scmp.ne.s32.totalorder %s4323_s3, %s3679_s20  ;;  %s38_s17 = int_to_ptr.vmem [resolvable:$true] %s37_s17 }
  0x17   :  { %p3683_p9 = scmp.lt.u32.totalorder %s3679_s20, %s4323_s3 }
  0x19   :  { %p3685_p10 = pnand %p3683_p9, %p3680_p8 }
  0x1b   :  { %3688 = shalt.err (!%p3685_p10)
}
  0x1c   :  { %s3689_s25 = scalar_lea.vmem %s38_s17, 4096  ;;  %p3694_p12 = scmp.lt.s32.totalorder %s38_s17, %s38_s17 }
  0x1d   :  { %p3690_p11 = scmp.ne.s32.totalorder %s38_s17, %s3689_s25  ;;  %p3695_p13 = scmp.lt.s32.totalorder %s3689_s25, %s3689_s25 }
  0x1f   :  { %p3696_p0 = por %p3695_p13, %p3694_p12 }
  0x21   :  { %p3697_p1 = pnand %p3696_p0, %p3690_p11 }
  0x23   :  { %3700 = shalt.err (!%p3697_p1)
}
  0x24   :  { %43 = dma.hbm_to_vmem [thread:$0]  %s4323_s3, 4096, %s38_s17, [#allocation8], %s3706_s12, %s3706_s12, %s3707_s13  }
  0x25   :  { %3701 = dma.done.wait [#allocation6], 2048  }
  0x26   :  { %3702 = vsyncadd [#allocation6], 4294965248 }
  0x27   :  { %3703 = dma.done.wait [#allocation8], 4096  }
  0x28   :  { %3704 = vsyncadd [#allocation8], 4294963200  ;;  %v3709_v1 = vmov 0.0|0.0   ;;  %vm97_vm0 = vcmask 1043456   ;;  %vm72_vm1 = vcmask 31744   ;;  %v56_v3 = vld [vmem:[%s4320_s0] sm:$0xff] }
  0x29   :  { %3264 = vmatprep.subr.bf16.mxu1 %v3709_v1  ;;  %v64_v2 = vld [vmem:[%s4321_s1] sm:$0xf]  ;;  %v57_v4 = vld [vmem:[%s4320_s0 + $0x8] sm:$0xff]  ;;  %2290 = vmatprep.mubr.msk.f32.mxu0 %vm72_vm1, %v56_v3  ;;  %v232_v7 = vld [vmem:[#allocation5 + $0x10] sm:$0xff]  ;;  %vm3710_vm2 = vmmov 0   ;;  %v3711_v34 = vmov 0.0  }
  0x2a   :  { %2288 = vmatprep.subr.msk.mxu0 %vm97_vm0, %v64_v2  ;;  %v230_v5 = vld [vmem:[#allocation5] sm:$0xff]  ;;  %v231_v6 = vld [vmem:[#allocation5 + $0x8] sm:$0xff]  ;;  %v233_v9 = vld [vmem:[#allocation5 + $0x18] sm:$0xff]  ;;  %2614 = vmatprep.mubr.msk.f32.mxu1 %vm3710_vm2, %v3711_v34  ;;  %vm1883_vm3 = vcmask 7168  }
  0x2b   :  { %2289 = vmatpush3.msk.msra.mxu0 %vm97_vm0, %v64_v2  ;;  %v3790_v8 = vpack.c.bf16 %v231_v6, %v230_v5  ;;  %v3795_v10 = vpack.c.bf16 %v233_v9, %v232_v7  ;;  %v234_v11 = vld [vmem:[#allocation5 + $0x20] sm:$0xff]  ;;  %v235_v12 = vld [vmem:[#allocation5 + $0x28] sm:$0xff]  ;;  %v236_v14 = vld [vmem:[#allocation5 + $0x30] sm:$0xff] }
  0x2c   :  { %2291 = vmatmul.mubr.msk.f32.vlgmr.msra.gmra.mrb[0].mxu0 %vm72_vm1, %v57_v4  ;;  %3072 = vmatprep.subr.bf16.mxu0 %v3709_v1  ;;  %v3801_v13 = vpack.c.bf16 %v235_v12, %v234_v11  ;;  %v237_v15 = vld [vmem:[#allocation5 + $0x38] sm:$0xff]  ;;  %v238_v17 = vld [vmem:[#allocation5 + $0x40] sm:$0xff]  ;;  %v239_v18 = vld [vmem:[#allocation5 + $0x48] sm:$0xff] }
  0x2d   :  { %3074 = vmatpush3.bf16.msra.mxu0 %v3790_v8  ;;  %3266 = vmatpush3.bf16.msra.mxu1 %v3790_v8  ;;  %v3807_v16 = vpack.c.bf16 %v237_v15, %v236_v14  ;;  %v3813_v19 = vpack.c.bf16 %v239_v18, %v238_v17  ;;  %v58_v20 = vld [vmem:[%s4320_s0 + $0x10] sm:$0xff]  ;;  %v59_v22 = vld [vmem:[%s4320_s0 + $0x18] sm:$0xff]  ;;  %v60_v25 = vld [vmem:[%s4320_s0 + $0x20] sm:$0xff] }
  0x2e   :  { %3075 = vmatprep.subr.bf16.mxu0 %v3709_v1  ;;  %3267 = vmatprep.subr.bf16.mxu1 %v3709_v1  ;;  %v240_v21 = vld [vmem:[#allocation5 + $0x50] sm:$0xff]  ;;  %v241_v23 = vld [vmem:[#allocation5 + $0x58] sm:$0xff]  ;;  %v61_v26 = vld [vmem:[%s4320_s0 + $0x28] sm:$0xff] }
  0x2f   :  { %2293 = vmatprep.mubr.msk.f32.mxu0 %vm72_vm1, %v58_v20  ;;  %v3830_v24 = vpack.c.bf16 %v241_v23, %v240_v21  ;;  %v242_v27 = vld [vmem:[#allocation5 + $0x60] sm:$0xff]  ;;  %v243_v28 = vld [vmem:[#allocation5 + $0x68] sm:$0xff]  ;;  %v244_v31 = vld [vmem:[#allocation5 + $0x70] sm:$0xff] }
  0x30   :  { %2294 = vmatmul.mubr.msk.f32.gmra.mrb[2].mxu0 %vm72_vm1, %v59_v22  ;;  %v62_v29 = vld [vmem:[%s4320_s0 + $0x30] sm:$0xff]  ;;  %v3846_v30 = vpack.c.bf16 %v243_v28, %v242_v27  ;;  %v245_v32 = vld [vmem:[#allocation5 + $0x78] sm:$0xff]  ;;  %v214_v40 = vld [vmem:[#allocation7] sm:$0xff] }
  0x31   :  { %3077 = vmatpush3.bf16.msra.mxu0 %v3795_v10  ;;  %3269 = vmatpush3.bf16.msra.mxu1 %v3795_v10  ;;  %v63_v33 = vld [vmem:[%s4320_s0 + $0x38] sm:$0xff]  ;;  %v3856_v35 = vpack.c.bf16 %v245_v32, %v244_v31  ;;  %v3871_v36 = vld [vmem:[%s4324_s4] ss:$0 sm:$0xff]  ;;  %v215_v41 = vld [vmem:[#allocation7 + $0x8] sm:$0xff] }
  0x32   :  { %3078 = vmatprep.subr.bf16.mxu0 %v3709_v1  ;;  %3270 = vmatprep.subr.bf16.mxu1 %v3709_v1  ;;  %v3876_v42 = vpack.c.bf16 %v215_v41, %v214_v40  ;;  %v216_v43 = vld [vmem:[#allocation7 + $0x10] sm:$0xff]  ;;  %v217_v44 = vld [vmem:[#allocation7 + $0x18] sm:$0xff]  ;;  %v218_v47 = vld [vmem:[#allocation7 + $0x20] sm:$0xff] }
  0x33   :  { %2296 = vmatprep.mubr.msk.f32.mxu0 %vm72_vm1, %v60_v25  ;;  %v3879_v46 = vpack.c.bf16 %v217_v44, %v216_v43  ;;  %v219_v48 = vld [vmem:[#allocation7 + $0x28] sm:$0xff]  ;;  %v220_v50 = vld [vmem:[#allocation7 + $0x30] sm:$0xff]  ;;  %v221_v51 = vld [vmem:[#allocation7 + $0x38] sm:$0xff] }
  0x34   :  { %2297 = vmatmul.mubr.msk.f32.gmra.mrb[4].mxu0 %vm72_vm1, %v61_v26  ;;  %v3885_v49 = vpack.c.bf16 %v219_v48, %v218_v47  ;;  %v3889_v52 = vpack.c.bf16 %v221_v51, %v220_v50  ;;  %v222_v53 = vld [vmem:[#allocation7 + $0x40] sm:$0xff]  ;;  %v223_v54 = vld [vmem:[#allocation7 + $0x48] sm:$0xff]  ;;  %v224_v56 = vld [vmem:[#allocation7 + $0x50] sm:$0xff] }
  0x35   :  { %3080 = vmatpush3.bf16.msra.mxu0 %v3801_v13  ;;  %3272 = vmatpush3.bf16.msra.mxu1 %v3801_v13  ;;  %v3893_v55 = vpack.c.bf16 %v223_v54, %v222_v53  ;;  %v225_v57 = vld [vmem:[#allocation7 + $0x58] sm:$0xff]  ;;  %v226_v59 = vld [vmem:[#allocation7 + $0x60] sm:$0xff]  ;;  %v227_v60 = vld [vmem:[#allocation7 + $0x68] sm:$0xff] }
  0x36   :  { %3081 = vmatprep.subr.bf16.mxu0 %v3709_v1  ;;  %3273 = vmatprep.subr.bf16.mxu1 %v3709_v1  ;;  %v3897_v58 = vpack.c.bf16 %v225_v57, %v224_v56  ;;  %v3901_v61 = vpack.c.bf16 %v227_v60, %v226_v59  ;;  %v228_v62 = vld [vmem:[#allocation7 + $0x70] sm:$0xff]  ;;  %v229_v63 = vld [vmem:[#allocation7 + $0x78] sm:$0xff]  ;;  %v1337_v56 = vld [vmem:[#allocation7 + $0x88] sm:$0xff] }
  0x37   :  { %2299 = vmatprep.mubr.msk.f32.mxu0 %vm72_vm1, %v62_v29  ;;  %v3905_v0 = vpack.c.bf16 %v229_v63, %v228_v62  ;;  %v1338_v57 = vld [vmem:[#allocation7 + $0x90] sm:$0xff]  ;;  %v1341_v59 = vld [vmem:[#allocation7 + $0xa8] sm:$0xff]  ;;  %v1343_v62 = vld [vmem:[#allocation7 + $0xb8] sm:$0xff] }
  0x38   :  { %2300 = vmatmul.mubr.msk.f32.gmra.mrb[6].mxu0 %vm72_vm1, %v63_v33 }
  0x39   :  { %3083 = vmatpush3.bf16.msra.mxu0 %v3807_v16  ;;  %3275 = vmatpush3.bf16.msra.mxu1 %v3807_v16 }
  0x3a   :  { %3084 = vmatprep.subr.bf16.mxu0 %v3709_v1  ;;  %3276 = vmatprep.subr.bf16.mxu1 %v3709_v1 }
  0x3b   :  { %2334 = vmatprep.mubr.msk.f32.mxu0 %vm3710_vm2, %v3711_v34 }
  0x3d   :  { %3086 = vmatpush3.bf16.msra.mxu0 %v3813_v19  ;;  %3278 = vmatpush3.bf16.msra.mxu1 %v3813_v19 }
  0x3e   :  { %3087 = vmatprep.subr.bf16.mxu0 %v3709_v1  ;;  %3279 = vmatprep.subr.bf16.mxu1 %v3709_v1 }
  0x41   :  { %3089 = vmatpush3.bf16.msra.mxu0 %v3830_v24  ;;  %3281 = vmatpush3.bf16.msra.mxu1 %v3830_v24 }
  0x42   :  { %3090 = vmatprep.subr.bf16.mxu0 %v3709_v1  ;;  %3282 = vmatprep.subr.bf16.mxu1 %v3709_v1 }
  0x45   :  { %3092 = vmatpush3.bf16.msra.mxu0 %v3846_v30  ;;  %3284 = vmatpush3.bf16.msra.mxu1 %v3846_v30 }
  0x46   :  { %3093 = vmatprep.subr.bf16.mxu0 %v3709_v1  ;;  %3285 = vmatprep.subr.bf16.mxu1 %v3709_v1 }
  0x49   :  { %3095 = vmatpush3.bf16.msra.mxu0 %v3856_v35  ;;  %3287 = vmatpush3.bf16.msra.mxu1 %v3856_v35 }
  0x4a   :  { %3096 = vmatprep.subr.bf16.mxu0 %v3709_v1  ;;  %3312 = vmatprep.subr.bf16.mxu1 %v3709_v1 }
  0xff   :  { %v3873_v37 = vpop.f32.mrb[0].mxu0 }
 0x100   :  { %v167_v38 = vpop.f32.mrb[1].mxu0  ;;  %v173_v12 = vadd.f32 %v3873_v37, %v3871_v36 }
 0x101   :  { %v168_v39 = vadd.f32 %v3871_v36, %v167_v38 }
 0x103   :  { %3625 = vtanh.f32 %v168_v39  ;;  %v3928_v2 = vpop.f32.mrb[2].mxu0 }
 0x104   :  { %v177_v3 = vpop.f32.mrb[3].mxu0  ;;  %v183_v31 = vadd.f32 %v3928_v2, %v3871_v36  ;;  %v1345_v2 = vld [vmem:[#allocation7 + $0xc8] sm:$0xff] }
 0x105   :  { %v178_v22 = vadd.f32 %v3871_v36, %v177_v3 }
 0x107   :  { %v3930_v4 = vpop.f32.mrb[4].mxu0 }
 0x108   :  { %v3932_v5 = vpop.f32.mrb[5].mxu0  ;;  %v193_v48 = vadd.f32 %v3930_v4, %v3871_v36  ;;  %v4178_v4 = vld [vmem:[%s4324_s4 + $0x1] ss:$0 sm:$0xff] }
 0x109   :  { %v188_v41 = vadd.f32 %v3871_v36, %v3932_v5  ;;  %v1346_v5 = vld [vmem:[#allocation7 + $0xd0] sm:$0xff] }
 0x10b   :  { %v3934_v6 = vpop.f32.mrb[6].mxu0 }
 0x10c   :  { %v3936_v7 = vpop.f32.mrb[7].mxu0 }
 0x10d   :  { %v3626_v45 = vpop.eup %3625 }
 0x10e   :  { %2335 = vmatmul.mubr.f32.vlgmr.msra.gmra.mrb[8].mxu0 %v3626_v45 }
 0x10f   :  { %3098 = vmatpush3.bf16.msra.mxu0 %v3876_v42  ;;  %2369 = vmatprep.mubr.msk.f32.mxu0 %vm3710_vm2, %v3711_v34 }
 0x110   :  { %3099 = vmatprep.subr.bf16.mxu0 %v3709_v1 }
 0x113   :  { %3101 = vmatpush3.bf16.msra.mxu0 %v3879_v46 }
 0x114   :  { %3102 = vmatprep.subr.bf16.mxu0 %v3709_v1 }
 0x117   :  { %3104 = vmatpush3.bf16.msra.mxu0 %v3885_v49 }
 0x118   :  { %3105 = vmatprep.subr.bf16.mxu0 %v3709_v1 }
 0x11b   :  { %3107 = vmatpush3.bf16.msra.mxu0 %v3889_v52 }
 0x11c   :  { %3108 = vmatprep.subr.bf16.mxu0 %v3709_v1 }
 0x11f   :  { %3110 = vmatpush3.bf16.msra.mxu0 %v3893_v55 }
 0x120   :  { %3111 = vmatprep.subr.bf16.mxu0 %v3709_v1 }
 0x123   :  { %3113 = vmatpush3.bf16.msra.mxu0 %v3897_v58 }
 0x124   :  { %3114 = vmatprep.subr.bf16.mxu0 %v3709_v1 }
 0x127   :  { %3116 = vmatpush3.bf16.msra.mxu0 %v3901_v61 }
 0x128   :  { %3117 = vmatprep.subr.bf16.mxu0 %v3709_v1 }
 0x12b   :  { %3119 = vmatpush3.bf16.msra.mxu0 %v3905_v0 }
 0x12c   :  { %3120 = vmatprep.subr.bf16.mxu0 %v3709_v1 }
 0x12e   :  { %2370 = vmatmul.mubr.f32.vlgmr.msra.gmra.mrb[10].mxu0 %v3626_v45 }
 0x12f   :  { %3122 = vmatpush3.bf16.msra.mxu0 %v3790_v8  ;;  %2404 = vmatprep.mubr.msk.f32.mxu0 %vm3710_vm2, %v3711_v34 }
 0x130   :  { %3123 = vmatprep.subr.bf16.mxu0 %v3709_v1 }
 0x133   :  { %3125 = vmatpush3.bf16.msra.mxu0 %v3795_v10 }
 0x134   :  { %3126 = vmatprep.subr.bf16.mxu0 %v3709_v1 }
 0x137   :  { %3128 = vmatpush3.bf16.msra.mxu0 %v3801_v13 }
 0x138   :  { %3129 = vmatprep.subr.bf16.mxu0 %v3709_v1 }
 0x13b   :  { %3131 = vmatpush3.bf16.msra.mxu0 %v3807_v16 }
 0x13c   :  { %3132 = vmatprep.subr.bf16.mxu0 %v3709_v1 }
 0x13f   :  { %3134 = vmatpush3.bf16.msra.mxu0 %v3813_v19 }
 0x140   :  { %3135 = vmatprep.subr.bf16.mxu0 %v3709_v1 }
 0x143   :  { %3137 = vmatpush3.bf16.msra.mxu0 %v3830_v24 }
 0x144   :  { %3138 = vmatprep.subr.bf16.mxu0 %v3709_v1 }
 0x147   :  { %3140 = vmatpush3.bf16.msra.mxu0 %v3846_v30 }
 0x148   :  { %3141 = vmatprep.subr.bf16.mxu0 %v3709_v1 }
 0x14b   :  { %3143 = vmatpush3.bf16.msra.mxu0 %v3856_v35 }
 0x14c   :  { %3144 = vmatprep.subr.bf16.mxu0 %v3709_v1 }
 0x1e1   :  { %v3938_v9 = vpop.f32.mrb[8].mxu0 }
 0x1e2   :  { %v2336_v11 = vpop.f32.mrb[9].mxu0 }
 0x201   :  { %v394_v14 = vpop.f32.mrb[10].mxu0 }
 0x202   :  { %v398_v15 = vadd.f32 %v394_v14, %v173_v12  ;;  %v2371_v17 = vpop.f32.mrb[11].mxu0  ;;  %v1348_v12 = vld [vmem:[#allocation7 + $0xe0] sm:$0xff]  ;;  %v1349_v14 = vld [vmem:[#allocation7 + $0xe8] sm:$0xff] }
 0x203   :  { %v1350_v17 = vld [vmem:[#allocation7 + $0xf0] sm:$0xff] }
 0x204   :  { %3627 = vtanh.f32 %v398_v15  ;;  %v4188_v15 = vpack.c.bf16 %v1349_v14, %v1348_v12 }
 0x20e   :  { %v3628_v18 = vpop.eup %3627 }
 0x20f   :  { %2405 = vmatmul.mubr.f32.vlgmr.msra.gmra.mrb[12].mxu0 %v3628_v18 }
 0x210   :  { %3146 = vmatpush3.bf16.msra.mxu0 %v3876_v42  ;;  %2439 = vmatprep.mubr.msk.f32.mxu0 %vm3710_vm2, %v3711_v34 }
 0x211   :  { %3147 = vmatprep.subr.bf16.mxu0 %v3709_v1 }
 0x214   :  { %3149 = vmatpush3.bf16.msra.mxu0 %v3879_v46 }
 0x215   :  { %3150 = vmatprep.subr.bf16.mxu0 %v3709_v1 }
 0x218   :  { %3152 = vmatpush3.bf16.msra.mxu0 %v3885_v49 }
 0x219   :  { %3153 = vmatprep.subr.bf16.mxu0 %v3709_v1 }
 0x21c   :  { %3155 = vmatpush3.bf16.msra.mxu0 %v3889_v52 }
 0x21d   :  { %3156 = vmatprep.subr.bf16.mxu0 %v3709_v1 }
 0x220   :  { %3158 = vmatpush3.bf16.msra.mxu0 %v3893_v55 }
 0x221   :  { %3159 = vmatprep.subr.bf16.mxu0 %v3709_v1 }
 0x224   :  { %3161 = vmatpush3.bf16.msra.mxu0 %v3897_v58 }
 0x225   :  { %3162 = vmatprep.subr.bf16.mxu0 %v3709_v1 }
 0x228   :  { %3164 = vmatpush3.bf16.msra.mxu0 %v3901_v61 }
 0x229   :  { %3165 = vmatprep.subr.bf16.mxu0 %v3709_v1 }
 0x22c   :  { %3167 = vmatpush3.bf16.msra.mxu0 %v3905_v0 }
 0x22d   :  { %3168 = vmatprep.subr.bf16.mxu0 %v3709_v1 }
 0x22f   :  { %2440 = vmatmul.mubr.f32.vlgmr.msra.gmra.mrb[14].mxu0 %v3628_v18  ;;  %v1351_v18 = vld [vmem:[#allocation7 + $0xf8] sm:$0xff] }
 0x230   :  { %3170 = vmatpush3.bf16.msra.mxu0 %v3790_v8  ;;  %2474 = vmatprep.mubr.msk.f32.mxu0 %vm3710_vm2, %v3711_v34 }
 0x231   :  { %3171 = vmatprep.subr.bf16.mxu0 %v3709_v1 }
 0x234   :  { %3173 = vmatpush3.bf16.msra.mxu0 %v3795_v10 }
 0x235   :  { %3174 = vmatprep.subr.bf16.mxu0 %v3709_v1 }
 0x238   :  { %3176 = vmatpush3.bf16.msra.mxu0 %v3801_v13 }
 0x239   :  { %3177 = vmatprep.subr.bf16.mxu0 %v3709_v1 }
 0x23c   :  { %3179 = vmatpush3.bf16.msra.mxu0 %v3807_v16 }
 0x23d   :  { %3180 = vmatprep.subr.bf16.mxu0 %v3709_v1 }
 0x240   :  { %3182 = vmatpush3.bf16.msra.mxu0 %v3813_v19 }
 0x241   :  { %3183 = vmatprep.subr.bf16.mxu0 %v3709_v1 }
 0x244   :  { %3185 = vmatpush3.bf16.msra.mxu0 %v3830_v24 }
 0x245   :  { %3186 = vmatprep.subr.bf16.mxu0 %v3709_v1 }
 0x248   :  { %3188 = vmatpush3.bf16.msra.mxu0 %v3846_v30 }
 0x249   :  { %3189 = vmatprep.subr.bf16.mxu0 %v3709_v1 }
 0x24c   :  { %3191 = vmatpush3.bf16.msra.mxu0 %v3856_v35 }
 0x24d   :  { %3192 = vmatprep.subr.bf16.mxu0 %v3709_v1 }
 0x2e2   :  { %v3978_v20 = vpop.f32.mrb[12].mxu0 }
 0x2e3   :  { %v2406_v21 = vpop.f32.mrb[13].mxu0 }
 0x302   :  { %v538_v23 = vpop.f32.mrb[14].mxu0 }
 0x303   :  { %v542_v25 = vadd.f32 %v538_v23, %v178_v22  ;;  %v2441_v26 = vpop.f32.mrb[15].mxu0  ;;  %v467_v22 = vadd.f32 %v4178_v4, %v3978_v20 }
 0x305   :  { %3629 = vtanh.f32 %v542_v25 }
 0x30f   :  { %v3630_v27 = vpop.eup %3629 }
 0x310   :  { %2475 = vmatmul.mubr.f32.vlgmr.msra.gmra.mrb[16].mxu0 %v3630_v27 }
 0x311   :  { %3194 = vmatpush3.bf16.msra.mxu0 %v3876_v42  ;;  %2509 = vmatprep.mubr.msk.f32.mxu0 %vm3710_vm2, %v3711_v34 }
 0x312   :  { %3195 = vmatprep.subr.bf16.mxu0 %v3709_v1 }
 0x315   :  { %3197 = vmatpush3.bf16.msra.mxu0 %v3879_v46 }
 0x316   :  { %3198 = vmatprep.subr.bf16.mxu0 %v3709_v1 }
 0x319   :  { %3200 = vmatpush3.bf16.msra.mxu0 %v3885_v49 }
 0x31a   :  { %3201 = vmatprep.subr.bf16.mxu0 %v3709_v1 }
 0x31d   :  { %3203 = vmatpush3.bf16.msra.mxu0 %v3889_v52 }
 0x31e   :  { %3204 = vmatprep.subr.bf16.mxu0 %v3709_v1 }
 0x321   :  { %3206 = vmatpush3.bf16.msra.mxu0 %v3893_v55 }
 0x322   :  { %3207 = vmatprep.subr.bf16.mxu0 %v3709_v1 }
 0x325   :  { %3209 = vmatpush3.bf16.msra.mxu0 %v3897_v58 }
 0x326   :  { %3210 = vmatprep.subr.bf16.mxu0 %v3709_v1 }
 0x329   :  { %3212 = vmatpush3.bf16.msra.mxu0 %v3901_v61 }
 0x32a   :  { %3213 = vmatprep.subr.bf16.mxu0 %v3709_v1 }
 0x32d   :  { %3215 = vmatpush3.bf16.msra.mxu0 %v3905_v0 }
 0x32e   :  { %3216 = vmatprep.subr.bf16.mxu0 %v3709_v1 }
 0x330   :  { %2510 = vmatmul.mubr.f32.vlgmr.msra.gmra.mrb[18].mxu0 %v3630_v27 }
 0x331   :  { %3218 = vmatpush3.bf16.msra.mxu0 %v3790_v8  ;;  %2544 = vmatprep.mubr.msk.f32.mxu0 %vm3710_vm2, %v3711_v34 }
 0x332   :  { %3219 = vmatprep.subr.bf16.mxu0 %v3709_v1 }
 0x335   :  { %3221 = vmatpush3.bf16.msra.mxu0 %v3795_v10 }
 0x336   :  { %3222 = vmatprep.subr.bf16.mxu0 %v3709_v1 }
 0x339   :  { %3224 = vmatpush3.bf16.msra.mxu0 %v3801_v13 }
 0x33a   :  { %3225 = vmatprep.subr.bf16.mxu0 %v3709_v1 }
 0x33d   :  { %3227 = vmatpush3.bf16.msra.mxu0 %v3807_v16 }
 0x33e   :  { %3228 = vmatprep.subr.bf16.mxu0 %v3709_v1 }
 0x341   :  { %3230 = vmatpush3.bf16.msra.mxu0 %v3813_v19 }
 0x342   :  { %3231 = vmatprep.subr.bf16.mxu0 %v3709_v1 }
 0x345   :  { %3233 = vmatpush3.bf16.msra.mxu0 %v3830_v24 }
 0x346   :  { %3234 = vmatprep.subr.bf16.mxu0 %v3709_v1 }
 0x349   :  { %3236 = vmatpush3.bf16.msra.mxu0 %v3846_v30 }
 0x34a   :  { %3237 = vmatprep.subr.bf16.mxu0 %v3709_v1 }
 0x34d   :  { %3239 = vmatpush3.bf16.msra.mxu0 %v3856_v35 }
 0x34e   :  { %3240 = vmatprep.subr.bf16.mxu0 %v3709_v1 }
 0x3e3   :  { %v4017_v28 = vpop.f32.mrb[16].mxu0 }
 0x3e4   :  { %v2476_v29 = vpop.f32.mrb[17].mxu0  ;;  %v611_v20 = vadd.f32 %v4178_v4, %v4017_v28 }
 0x403   :  { %v682_v32 = vpop.f32.mrb[18].mxu0 }
 0x404   :  { %v686_v33 = vadd.f32 %v682_v32, %v183_v31  ;;  %v2511_v37 = vpop.f32.mrb[19].mxu0 }
 0x406   :  { %3631 = vtanh.f32 %v686_v33 }
 0x410   :  { %v3632_v38 = vpop.eup %3631 }
 0x411   :  { %2545 = vmatmul.mubr.f32.vlgmr.msra.gmra.mrb[20].mxu0 %v3632_v38 }
 0x412   :  { %3242 = vmatpush3.bf16.msra.mxu0 %v3876_v42  ;;  %2579 = vmatprep.mubr.msk.f32.mxu0 %vm3710_vm2, %v3711_v34 }
 0x413   :  { %3243 = vmatprep.subr.bf16.mxu0 %v3709_v1 }
 0x416   :  { %3245 = vmatpush3.bf16.msra.mxu0 %v3879_v46 }
 0x417   :  { %3246 = vmatprep.subr.bf16.mxu0 %v3709_v1 }
 0x41a   :  { %3248 = vmatpush3.bf16.msra.mxu0 %v3885_v49 }
 0x41b   :  { %3249 = vmatprep.subr.bf16.mxu0 %v3709_v1 }
 0x41e   :  { %3251 = vmatpush3.bf16.msra.mxu0 %v3889_v52 }
 0x41f   :  { %3252 = vmatprep.subr.bf16.mxu0 %v3709_v1 }
 0x422   :  { %3254 = vmatpush3.bf16.msra.mxu0 %v3893_v55 }
 0x423   :  { %3255 = vmatprep.subr.bf16.mxu0 %v3709_v1 }
 0x426   :  { %3257 = vmatpush3.bf16.msra.mxu0 %v3897_v58 }
 0x427   :  { %3258 = vmatprep.subr.bf16.mxu0 %v3709_v1 }
 0x42a   :  { %3260 = vmatpush3.bf16.msra.mxu0 %v3901_v61 }
 0x42b   :  { %3261 = vmatprep.subr.bf16.mxu0 %v3709_v1 }
 0x42e   :  { %3263 = vmatpush3.bf16.msra.mxu0 %v3905_v0 }
 0x42f   :  { %3288 = vmatprep.subr.bf16.mxu0 %v3709_v1 }
 0x431   :  { %2580 = vmatmul.mubr.f32.vlgmr.msra.gmra.mrb[22].mxu0 %v3632_v38 }
 0x432   :  { %3290 = vmatpush3.bf16.msra.mxu0 %v3876_v42  ;;  %2649 = vmatprep.mubr.msk.f32.mxu0 %vm3710_vm2, %v3711_v34 }
 0x433   :  { %3291 = vmatprep.subr.bf16.mxu0 %v3709_v1 }
 0x436   :  { %3293 = vmatpush3.bf16.msra.mxu0 %v3879_v46 }
 0x437   :  { %3294 = vmatprep.subr.bf16.mxu0 %v3709_v1 }
 0x43a   :  { %3296 = vmatpush3.bf16.msra.mxu0 %v3885_v49 }
 0x43b   :  { %3297 = vmatprep.subr.bf16.mxu0 %v3709_v1 }
 0x43e   :  { %3299 = vmatpush3.bf16.msra.mxu0 %v3889_v52 }
 0x43f   :  { %3300 = vmatprep.subr.bf16.mxu0 %v3709_v1 }
 0x442   :  { %3302 = vmatpush3.bf16.msra.mxu0 %v3893_v55 }
 0x443   :  { %3303 = vmatprep.subr.bf16.mxu0 %v3709_v1 }
 0x446   :  { %3305 = vmatpush3.bf16.msra.mxu0 %v3897_v58 }
 0x447   :  { %3306 = vmatprep.subr.bf16.mxu0 %v3709_v1 }
 0x44a   :  { %3308 = vmatpush3.bf16.msra.mxu0 %v3901_v61 }
 0x44b   :  { %3309 = vmatprep.subr.bf16.mxu0 %v3709_v1 }
 0x44e   :  { %3311 = vmatpush3.bf16.msra.mxu0 %v3905_v0 }
 0x44f   :  { %3336 = vmatprep.subr.bf16.mxu0 %v3709_v1 }
 0x4e4   :  { %v4057_v39 = vpop.f32.mrb[20].mxu0 }
 0x4e5   :  { %v2546_v40 = vpop.f32.mrb[21].mxu0  ;;  %v755_v28 = vadd.f32 %v4178_v4, %v4057_v39 }
 0x504   :  { %v826_v43 = vpop.f32.mrb[22].mxu0 }
 0x505   :  { %v830_v44 = vadd.f32 %v826_v43, %v188_v41  ;;  %v2581_v45 = vpop.f32.mrb[23].mxu0 }
 0x507   :  { %3633 = vtanh.f32 %v830_v44 }
 0x511   :  { %v3634_v47 = vpop.eup %3633 }
 0x512   :  { %2615 = vmatmul.mubr.f32.vlgmr.msra.gmra.mrb[0].mxu1 %v3634_v47  ;;  %2650 = vmatmul.mubr.f32.vlgmr.msra.gmra.mrb[24].mxu0 %v3634_v47 }
 0x513   :  { %3314 = vmatpush3.bf16.msra.mxu1 %v3790_v8  ;;  %3338 = vmatpush3.bf16.msra.mxu0 %v3876_v42 }
 0x514   :  { %3315 = vmatprep.subr.bf16.mxu1 %v3709_v1  ;;  %3339 = vmatprep.subr.bf16.mxu0 %v3709_v1 }
 0x515   :  { %2684 = vmatprep.mubr.msk.f32.mxu1 %vm3710_vm2, %v3711_v34  ;;  %2719 = vmatprep.mubr.msk.f32.mxu0 %vm3710_vm2, %v3711_v34 }
 0x517   :  { %3317 = vmatpush3.bf16.msra.mxu1 %v3795_v10  ;;  %3341 = vmatpush3.bf16.msra.mxu0 %v3879_v46 }
 0x518   :  { %3318 = vmatprep.subr.bf16.mxu1 %v3709_v1  ;;  %3342 = vmatprep.subr.bf16.mxu0 %v3709_v1 }
 0x51b   :  { %3320 = vmatpush3.bf16.msra.mxu1 %v3801_v13  ;;  %3344 = vmatpush3.bf16.msra.mxu0 %v3885_v49 }
 0x51c   :  { %3321 = vmatprep.subr.bf16.mxu1 %v3709_v1  ;;  %3345 = vmatprep.subr.bf16.mxu0 %v3709_v1 }
 0x51f   :  { %3323 = vmatpush3.bf16.msra.mxu1 %v3807_v16  ;;  %3347 = vmatpush3.bf16.msra.mxu0 %v3889_v52 }
 0x520   :  { %3324 = vmatprep.subr.bf16.mxu1 %v3709_v1  ;;  %3348 = vmatprep.subr.bf16.mxu0 %v3709_v1 }
 0x523   :  { %3326 = vmatpush3.bf16.msra.mxu1 %v3813_v19  ;;  %3350 = vmatpush3.bf16.msra.mxu0 %v3893_v55 }
 0x524   :  { %3327 = vmatprep.subr.bf16.mxu1 %v3709_v1  ;;  %3351 = vmatprep.subr.bf16.mxu0 %v3709_v1 }
 0x527   :  { %3329 = vmatpush3.bf16.msra.mxu1 %v3830_v24  ;;  %3353 = vmatpush3.bf16.msra.mxu0 %v3897_v58 }
 0x528   :  { %3330 = vmatprep.subr.bf16.mxu1 %v3709_v1  ;;  %3354 = vmatprep.subr.bf16.mxu0 %v3709_v1 }
 0x52b   :  { %3332 = vmatpush3.bf16.msra.mxu1 %v3846_v30  ;;  %3356 = vmatpush3.bf16.msra.mxu0 %v3901_v61 }
 0x52c   :  { %3333 = vmatprep.subr.bf16.mxu1 %v3709_v1  ;;  %3357 = vmatprep.subr.bf16.mxu0 %v3709_v1 }
 0x52f   :  { %3335 = vmatpush3.bf16.msra.mxu1 %v3856_v35  ;;  %3359 = vmatpush3.bf16.msra.mxu0 %v3905_v0 }
 0x530   :  { %3360 = vmatprep.subr.bf16.mxu1 %v3709_v1  ;;  %3384 = vmatprep.subr.bf16.mxu0 %v3709_v1 }
 0x5e5   :  { %v970_v50 = vpop.f32.mrb[24].mxu0 }
 0x5e6   :  { %v974_v51 = vadd.f32 %v970_v50, %v193_v48  ;;  %v2651_v53 = vpop.f32.mrb[25].mxu0 }
 0x5e8   :  { %3635 = vtanh.f32 %v974_v51 }
 0x5f2   :  { %v3636_v54 = vpop.eup %3635 }
 0x5f3   :  { %2685 = vmatmul.mubr.f32.vlgmr.msra.gmra.mrb[2].mxu1 %v3636_v54  ;;  %2720 = vmatmul.mubr.f32.vlgmr.msra.gmra.mrb[26].mxu0 %v3636_v54 }
 0x5f4   :  { %3362 = vmatpush3.bf16.msra.mxu1 %v3790_v8  ;;  %3386 = vmatpush3.bf16.msra.mxu0 %v3876_v42  ;;  %v198_v42 = vadd.f32 %v3871_v36, %v3936_v7  ;;  %v323_v7 = vadd.f32 %v4178_v4, %v3938_v9  ;;  %v4192_v9 = vpack.c.bf16 %v1351_v18, %v1350_v17 }
 0x5f5   :  { %3363 = vmatprep.subr.bf16.mxu1 %v3709_v1  ;;  %3387 = vmatprep.subr.bf16.mxu0 %v3709_v1 }
 0x5f6   :  { %2754 = vmatprep.mubr.msk.f32.mxu1 %vm3710_vm2, %v3711_v34  ;;  %2789 = vmatprep.mubr.msk.f32.mxu0 %vm3710_vm2, %v3711_v34 }
 0x5f8   :  { %3365 = vmatpush3.bf16.msra.mxu1 %v3795_v10  ;;  %3389 = vmatpush3.bf16.msra.mxu0 %v3879_v46 }
 0x5f9   :  { %3366 = vmatprep.subr.bf16.mxu1 %v3709_v1  ;;  %3390 = vmatprep.subr.bf16.mxu0 %v3709_v1 }
 0x5fc   :  { %3368 = vmatpush3.bf16.msra.mxu1 %v3801_v13  ;;  %3392 = vmatpush3.bf16.msra.mxu0 %v3885_v49 }
 0x5fd   :  { %3369 = vmatprep.subr.bf16.mxu1 %v3709_v1  ;;  %3393 = vmatprep.subr.bf16.mxu0 %v3709_v1 }
 0x600   :  { %3371 = vmatpush3.bf16.msra.mxu1 %v3807_v16  ;;  %3395 = vmatpush3.bf16.msra.mxu0 %v3889_v52 }
 0x601   :  { %3372 = vmatprep.subr.bf16.mxu1 %v3709_v1  ;;  %3396 = vmatprep.subr.bf16.mxu0 %v3709_v1 }
 0x604   :  { %3374 = vmatpush3.bf16.msra.mxu1 %v3813_v19  ;;  %3398 = vmatpush3.bf16.msra.mxu0 %v3893_v55 }
 0x605   :  { %3375 = vmatprep.subr.bf16.mxu1 %v3709_v1  ;;  %3399 = vmatprep.subr.bf16.mxu0 %v3709_v1 }
 0x608   :  { %3377 = vmatpush3.bf16.msra.mxu1 %v3830_v24  ;;  %3401 = vmatpush3.bf16.msra.mxu0 %v3897_v58  ;;  %v1339_v58 = vld [vmem:[#allocation7 + $0x98] sm:$0xff] }
 0x609   :  { %3378 = vmatprep.subr.bf16.mxu1 %v3709_v1  ;;  %3402 = vmatprep.subr.bf16.mxu0 %v3709_v1 }
 0x60c   :  { %3380 = vmatpush3.bf16.msra.mxu1 %v3846_v30  ;;  %3404 = vmatpush3.bf16.msra.mxu0 %v3901_v61  ;;  %v1342_v61 = vld [vmem:[#allocation7 + $0xb0] sm:$0xff] }
 0x60d   :  { %3381 = vmatprep.subr.bf16.mxu1 %v3709_v1  ;;  %3405 = vmatprep.subr.bf16.mxu0 %v3709_v1  ;;  %v4169_v63 = vpack.c.bf16 %v1343_v62, %v1342_v61 }
 0x610   :  { %3383 = vmatpush3.bf16.msra.mxu1 %v3856_v35  ;;  %3407 = vmatpush3.bf16.msra.mxu0 %v3905_v0  ;;  %v1344_v0 = vld [vmem:[#allocation7 + $0xc0] sm:$0xff] }
 0x611   :  { %3408 = vmatprep.subr.bf16.mxu1 %v3709_v1  ;;  %v4173_v3 = vpack.c.bf16 %v1345_v2, %v1344_v0 }
 0x6c6   :  { %v1114_v46 = vpop.f32.mrb[26].mxu0 }
 0x6c7   :  { %v1118_v49 = vadd.f32 %v1114_v46, %v198_v42  ;;  %v2721_v52 = vpop.f32.mrb[27].mxu0 }
 0x6c9   :  { %3637 = vtanh.f32 %v1118_v49 }
 0x6d3   :  { %v3638_v55 = vpop.eup %3637 }
 0x6d4   :  { %2755 = vmatmul.mubr.f32.vlgmr.msra.gmra.mrb[4].mxu1 %v3638_v55  ;;  %2790 = vmatmul.mubr.f32.vlgmr.msra.gmra.mrb[28].mxu0 %v3638_v55  ;;  %v1903_v55 = vld [vmem:[%s4325_s5] ss:$0 sm:$0xff] }
 0x6d5   :  { %3410 = vmatpush3.bf16.msra.mxu1 %v3790_v8  ;;  %2824 = vmatprep.mubr.msk.f32.mxu1 %vm3710_vm2, %v3711_v34  ;;  %v203_v8 = vadd.f32 %v3934_v6, %v3871_v36  ;;  %v1340_v36 = vld [vmem:[#allocation7 + $0xa0] sm:$0xff]  ;;  %v1347_v6 = vld [vmem:[#allocation7 + $0xd8] sm:$0xff] }
 0x6d6   :  { %3411 = vmatprep.subr.bf16.mxu1 %v3709_v1  ;;  %v4165_v60 = vpack.c.bf16 %v1341_v59, %v1340_v36  ;;  %v4184_v11 = vpack.c.bf16 %v1347_v6, %v1346_v5 }
 0x6d9   :  { %3413 = vmatpush3.bf16.msra.mxu1 %v3795_v10 }
 0x6da   :  { %3414 = vmatprep.subr.bf16.mxu1 %v3709_v1 }
 0x6dd   :  { %3416 = vmatpush3.bf16.msra.mxu1 %v3801_v13 }
 0x6de   :  { %3417 = vmatprep.subr.bf16.mxu1 %v3709_v1 }
 0x6e1   :  { %3419 = vmatpush3.bf16.msra.mxu1 %v3807_v16 }
 0x6e2   :  { %3420 = vmatprep.subr.bf16.mxu1 %v3709_v1 }
 0x6e5   :  { %3422 = vmatpush3.bf16.msra.mxu1 %v3813_v19  ;;  %v1336_v19 = vld [vmem:[#allocation7 + $0x80] sm:$0xff] }
 0x6e6   :  { %3423 = vmatprep.subr.bf16.mxu1 %v3709_v1 }
 0x6e9   :  { %3425 = vmatpush3.bf16.msra.mxu1 %v3830_v24  ;;  %v4156_v24 = vpack.c.bf16 %v1337_v56, %v1336_v19 }
 0x6ea   :  { %3426 = vmatprep.subr.bf16.mxu1 %v3709_v1 }
 0x6ed   :  { %3428 = vmatpush3.bf16.msra.mxu1 %v3846_v30 }
 0x6ee   :  { %3429 = vmatprep.subr.bf16.mxu1 %v3709_v1 }
 0x6f1   :  { %3431 = vmatpush3.bf16.msra.mxu1 %v3856_v35  ;;  %v4159_v35 = vpack.c.bf16 %v1339_v58, %v1338_v57 }
 0x6f2   :  { %3432 = vmatprep.subr.bf16.mxu1 %v3709_v1 }
 0x7a7   :  { %v1258_v10 = vpop.f32.mrb[28].mxu0 }
 0x7a8   :  { %v1262_v13 = vadd.f32 %v1258_v10, %v203_v8  ;;  %v2791_v16 = vpop.f32.mrb[29].mxu0  ;;  %v1904_v10 = vld [vmem:[#allocation4] ss:$0 sm:$0xff] }
 0x7aa   :  { %3639 = vtanh.f32 %v1262_v13 }
 0x7ab   :  { %3641 = vtanh.f32 %v323_v7 }
 0x7b4   :  { %v3640_v30 = vpop.eup %3639 }
 0x7b5   :  { %2825 = vmatmul.mubr.f32.vlgmr.msra.gmra.mrb[6].mxu1 %v3640_v30  ;;  %v3642_v21 = vpop.eup %3641 }
 0x7b6   :  { %3434 = vmatpush3.bf16.msra.mxu1 %v4156_v24  ;;  %2859 = vmatprep.mubr.msk.f32.mxu1 %vm3710_vm2, %v3711_v34 }
 0x7b7   :  { %3435 = vmatprep.subr.bf16.mxu1 %v3709_v1 }
 0x7ba   :  { %3437 = vmatpush3.bf16.msra.mxu1 %v4159_v35 }
 0x7bb   :  { %3438 = vmatprep.subr.bf16.mxu1 %v3709_v1 }
 0x7be   :  { %3440 = vmatpush3.bf16.msra.mxu1 %v4165_v60 }
 0x7bf   :  { %3441 = vmatprep.subr.bf16.mxu1 %v3709_v1 }
 0x7c2   :  { %3443 = vmatpush3.bf16.msra.mxu1 %v4169_v63 }
 0x7c3   :  { %3444 = vmatprep.subr.bf16.mxu1 %v3709_v1 }
 0x7c6   :  { %3446 = vmatpush3.bf16.msra.mxu1 %v4173_v3 }
 0x7c7   :  { %3447 = vmatprep.subr.bf16.mxu1 %v3709_v1 }
 0x7ca   :  { %3449 = vmatpush3.bf16.msra.mxu1 %v4184_v11 }
 0x7cb   :  { %3450 = vmatprep.subr.bf16.mxu1 %v3709_v1 }
 0x7ce   :  { %3452 = vmatpush3.bf16.msra.mxu1 %v4188_v15 }
 0x7cf   :  { %3453 = vmatprep.subr.bf16.mxu1 %v3709_v1 }
 0x7d2   :  { %3455 = vmatpush3.bf16.msra.mxu1 %v4192_v9 }
 0x7d3   :  { %3456 = vmatprep.subr.bf16.mxu1 %v3709_v1 }
 0x7d5   :  { %2860 = vmatmul.mubr.f32.vlgmr.msra.gmra.mrb[8].mxu1 %v3642_v21 }
 0x7d6   :  { %3458 = vmatpush3.bf16.msra.mxu1 %v4156_v24  ;;  %2894 = vmatprep.mubr.msk.f32.mxu1 %vm3710_vm2, %v3711_v34 }
 0x7d7   :  { %3459 = vmatprep.subr.bf16.mxu1 %v3709_v1 }
 0x7da   :  { %3461 = vmatpush3.bf16.msra.mxu1 %v4159_v35 }
 0x7db   :  { %3462 = vmatprep.subr.bf16.mxu1 %v3709_v1 }
 0x7de   :  { %3464 = vmatpush3.bf16.msra.mxu1 %v4165_v60 }
 0x7df   :  { %3465 = vmatprep.subr.bf16.mxu1 %v3709_v1 }
 0x7e2   :  { %3467 = vmatpush3.bf16.msra.mxu1 %v4169_v63 }
 0x7e3   :  { %3468 = vmatprep.subr.bf16.mxu1 %v3709_v1 }
 0x7e6   :  { %3470 = vmatpush3.bf16.msra.mxu1 %v4173_v3 }
 0x7e7   :  { %3471 = vmatprep.subr.bf16.mxu1 %v3709_v1 }
 0x7ea   :  { %3473 = vmatpush3.bf16.msra.mxu1 %v4184_v11 }
 0x7eb   :  { %3474 = vmatprep.subr.bf16.mxu1 %v3709_v1 }
 0x7ee   :  { %3476 = vmatpush3.bf16.msra.mxu1 %v4188_v15 }
 0x7ef   :  { %3477 = vmatprep.subr.bf16.mxu1 %v3709_v1 }
 0x7f2   :  { %3479 = vmatpush3.bf16.msra.mxu1 %v4192_v9 }
 0x7f3   :  { %3480 = vmatprep.subr.bf16.mxu1 %v3709_v1 }
 0x8a8   :  { %v1421_v23 = vpop.f32.mrb[8].mxu1 }
 0x8a9   :  { %v1425_v25 = vadd.f32 %v1421_v23, %v467_v22  ;;  %v2861_v26 = vpop.f32.mrb[9].mxu1 }
 0x8ab   :  { %3643 = vtanh.f32 %v1425_v25 }
 0x8b5   :  { %v3644_v27 = vpop.eup %3643 }
 0x8b6   :  { %2895 = vmatmul.mubr.f32.vlgmr.msra.gmra.mrb[10].mxu1 %v3644_v27 }
 0x8b7   :  { %3482 = vmatpush3.bf16.msra.mxu1 %v4156_v24  ;;  %2929 = vmatprep.mubr.msk.f32.mxu1 %vm3710_vm2, %v3711_v34 }
 0x8b8   :  { %3483 = vmatprep.subr.bf16.mxu1 %v3709_v1 }
 0x8bb   :  { %3485 = vmatpush3.bf16.msra.mxu1 %v4159_v35 }
 0x8bc   :  { %3486 = vmatprep.subr.bf16.mxu1 %v3709_v1 }
 0x8bf   :  { %3488 = vmatpush3.bf16.msra.mxu1 %v4165_v60 }
 0x8c0   :  { %3489 = vmatprep.subr.bf16.mxu1 %v3709_v1 }
 0x8c3   :  { %3491 = vmatpush3.bf16.msra.mxu1 %v4169_v63 }
 0x8c4   :  { %3492 = vmatprep.subr.bf16.mxu1 %v3709_v1 }
 0x8c7   :  { %3494 = vmatpush3.bf16.msra.mxu1 %v4173_v3 }
 0x8c8   :  { %3495 = vmatprep.subr.bf16.mxu1 %v3709_v1 }
 0x8cb   :  { %3497 = vmatpush3.bf16.msra.mxu1 %v4184_v11 }
 0x8cc   :  { %3498 = vmatprep.subr.bf16.mxu1 %v3709_v1 }
 0x8cf   :  { %3500 = vmatpush3.bf16.msra.mxu1 %v4188_v15 }
 0x8d0   :  { %3501 = vmatprep.subr.bf16.mxu1 %v3709_v1 }
 0x8d3   :  { %3503 = vmatpush3.bf16.msra.mxu1 %v4192_v9 }
 0x8d4   :  { %3504 = vmatprep.subr.bf16.mxu1 %v3709_v1 }
 0x989   :  { %v1494_v29 = vpop.f32.mrb[10].mxu1 }
 0x98a   :  { %v1498_v31 = vadd.f32 %v1494_v29, %v611_v20  ;;  %v2896_v32 = vpop.f32.mrb[11].mxu1 }
 0x98c   :  { %3645 = vtanh.f32 %v1498_v31 }
 0x996   :  { %v3646_v33 = vpop.eup %3645 }
 0x997   :  { %2930 = vmatmul.mubr.f32.vlgmr.msra.gmra.mrb[12].mxu1 %v3646_v33 }
 0x998   :  { %3506 = vmatpush3.bf16.msra.mxu1 %v4156_v24  ;;  %2964 = vmatprep.mubr.msk.f32.mxu1 %vm3710_vm2, %v3711_v34 }
 0x999   :  { %3507 = vmatprep.subr.bf16.mxu1 %v3709_v1 }
 0x99c   :  { %3509 = vmatpush3.bf16.msra.mxu1 %v4159_v35 }
 0x99d   :  { %3510 = vmatprep.subr.bf16.mxu1 %v3709_v1 }
 0x9a0   :  { %3512 = vmatpush3.bf16.msra.mxu1 %v4165_v60 }
 0x9a1   :  { %3513 = vmatprep.subr.bf16.mxu1 %v3709_v1 }
 0x9a4   :  { %3515 = vmatpush3.bf16.msra.mxu1 %v4169_v63 }
 0x9a5   :  { %3516 = vmatprep.subr.bf16.mxu1 %v3709_v1 }
 0x9a8   :  { %3518 = vmatpush3.bf16.msra.mxu1 %v4173_v3 }
 0x9a9   :  { %3519 = vmatprep.subr.bf16.mxu1 %v3709_v1 }
 0x9ac   :  { %3521 = vmatpush3.bf16.msra.mxu1 %v4184_v11 }
 0x9ad   :  { %3522 = vmatprep.subr.bf16.mxu1 %v3709_v1 }
 0x9b0   :  { %3524 = vmatpush3.bf16.msra.mxu1 %v4188_v15 }
 0x9b1   :  { %3525 = vmatprep.subr.bf16.mxu1 %v3709_v1 }
 0x9b4   :  { %3527 = vmatpush3.bf16.msra.mxu1 %v4192_v9 }
 0x9b5   :  { %3528 = vmatprep.subr.bf16.mxu1 %v3709_v1 }
 0xa6a   :  { %v1567_v37 = vpop.f32.mrb[12].mxu1 }
 0xa6b   :  { %v1571_v38 = vadd.f32 %v1567_v37, %v755_v28  ;;  %v2931_v40 = vpop.f32.mrb[13].mxu1 }
 0xa6d   :  { %3647 = vtanh.f32 %v1571_v38 }
 0xa77   :  { %v3648_v41 = vpop.eup %3647 }
 0xa78   :  { %2965 = vmatmul.mubr.f32.vlgmr.msra.gmra.mrb[0].mxu1 %v3648_v41 }
 0xa79   :  { %3530 = vmatpush3.bf16.msra.mxu1 %v4156_v24  ;;  %2999 = vmatprep.mubr.msk.f32.mxu1 %vm3710_vm2, %v3711_v34 }
 0xa7a   :  { %3531 = vmatprep.subr.bf16.mxu1 %v3709_v1 }
 0xa7d   :  { %3533 = vmatpush3.bf16.msra.mxu1 %v4159_v35 }
 0xa7e   :  { %3534 = vmatprep.subr.bf16.mxu1 %v3709_v1 }
 0xa81   :  { %3536 = vmatpush3.bf16.msra.mxu1 %v4165_v60 }
 0xa82   :  { %3537 = vmatprep.subr.bf16.mxu1 %v3709_v1 }
 0xa85   :  { %3539 = vmatpush3.bf16.msra.mxu1 %v4169_v63 }
 0xa86   :  { %3540 = vmatprep.subr.bf16.mxu1 %v3709_v1 }
 0xa89   :  { %3542 = vmatpush3.bf16.msra.mxu1 %v4173_v3 }
 0xa8a   :  { %3543 = vmatprep.subr.bf16.mxu1 %v3709_v1 }
 0xa8d   :  { %3545 = vmatpush3.bf16.msra.mxu1 %v4184_v11 }
 0xa8e   :  { %3546 = vmatprep.subr.bf16.mxu1 %v3709_v1 }
 0xa91   :  { %3548 = vmatpush3.bf16.msra.mxu1 %v4188_v15 }
 0xa92   :  { %3549 = vmatprep.subr.bf16.mxu1 %v3709_v1 }
 0xa95   :  { %3551 = vmatpush3.bf16.msra.mxu1 %v4192_v9 }
 0xa96   :  { %3552 = vmatprep.subr.bf16.mxu1 %v3709_v1 }
 0xb4b   :  { %v1640_v39 = vpop.f32.mrb[0].mxu1 }
 0xb4c   :  { %v3606_v43 = vadd.f32 %v4178_v4, %v1640_v39  ;;  %v2966_v44 = vpop.f32.mrb[1].mxu1 }
 0xb4e   :  { %3649 = vtanh.f32 %v3606_v43 }
 0xb58   :  { %v3650_v45 = vpop.eup %3649 }
 0xb59   :  { %3000 = vmatmul.mubr.f32.vlgmr.msra.gmra.mrb[2].mxu1 %v3650_v45 }
 0xb5a   :  { %3554 = vmatpush3.bf16.msra.mxu1 %v4156_v24  ;;  %3034 = vmatprep.mubr.msk.f32.mxu1 %vm3710_vm2, %v3711_v34 }
 0xb5b   :  { %3555 = vmatprep.subr.bf16.mxu1 %v3709_v1 }
 0xb5e   :  { %3557 = vmatpush3.bf16.msra.mxu1 %v4159_v35 }
 0xb5f   :  { %3558 = vmatprep.subr.bf16.mxu1 %v3709_v1 }
 0xb62   :  { %3560 = vmatpush3.bf16.msra.mxu1 %v4165_v60 }
 0xb63   :  { %3561 = vmatprep.subr.bf16.mxu1 %v3709_v1 }
 0xb66   :  { %3563 = vmatpush3.bf16.msra.mxu1 %v4169_v63 }
 0xb67   :  { %3564 = vmatprep.subr.bf16.mxu1 %v3709_v1 }
 0xb6a   :  { %3566 = vmatpush3.bf16.msra.mxu1 %v4173_v3 }
 0xb6b   :  { %3567 = vmatprep.subr.bf16.mxu1 %v3709_v1 }
 0xb6e   :  { %3569 = vmatpush3.bf16.msra.mxu1 %v4184_v11 }
 0xb6f   :  { %3570 = vmatprep.subr.bf16.mxu1 %v3709_v1 }
 0xb72   :  { %3572 = vmatpush3.bf16.msra.mxu1 %v4188_v15 }
 0xb73   :  { %3573 = vmatprep.subr.bf16.mxu1 %v3709_v1 }
 0xb76   :  { %3575 = vmatpush3.bf16.msra.mxu1 %v4192_v9 }
 0xb77   :  { %3576 = vmatprep.subr.bf16.mxu1 %v3709_v1 }
 0xc2c   :  { %v1713_v47 = vpop.f32.mrb[2].mxu1 }
 0xc2d   :  { %v3607_v48 = vadd.f32 %v4178_v4, %v1713_v47  ;;  %v3001_v50 = vpop.f32.mrb[3].mxu1 }
 0xc2f   :  { %3651 = vtanh.f32 %v3607_v48 }
 0xc39   :  { %v3652_v51 = vpop.eup %3651 }
 0xc3a   :  { %3035 = vmatmul.mubr.f32.vlgmr.msra.gmra.mrb[4].mxu1 %v3652_v51 }
 0xc3b   :  { %3578 = vmatpush3.bf16.msra.mxu1 %v4156_v24  ;;  %3069 = vmatprep.mubr.msk.f32.mxu1 %vm3710_vm2, %v3711_v34 }
 0xc3c   :  { %3579 = vmatprep.subr.bf16.mxu1 %v3709_v1 }
 0xc3f   :  { %3581 = vmatpush3.bf16.msra.mxu1 %v4159_v35 }
 0xc40   :  { %3582 = vmatprep.subr.bf16.mxu1 %v3709_v1 }
 0xc43   :  { %3584 = vmatpush3.bf16.msra.mxu1 %v4165_v60 }
 0xc44   :  { %3585 = vmatprep.subr.bf16.mxu1 %v3709_v1 }
 0xc47   :  { %3587 = vmatpush3.bf16.msra.mxu1 %v4169_v63 }
 0xc48   :  { %3588 = vmatprep.subr.bf16.mxu1 %v3709_v1 }
 0xc4b   :  { %3590 = vmatpush3.bf16.msra.mxu1 %v4173_v3 }
 0xc4c   :  { %3591 = vmatprep.subr.bf16.mxu1 %v3709_v1 }
 0xc4f   :  { %3593 = vmatpush3.bf16.msra.mxu1 %v4184_v11 }
 0xc50   :  { %3594 = vmatprep.subr.bf16.mxu1 %v3709_v1 }
 0xc53   :  { %3596 = vmatpush3.bf16.msra.mxu1 %v4188_v15 }
 0xc54   :  { %3597 = vmatprep.subr.bf16.mxu1 %v3709_v1 }
 0xc57   :  { %3599 = vmatpush3.bf16.msra.mxu1 %v4192_v9 }
 0xd0d   :  { %v1786_v34 = vpop.f32.mrb[4].mxu1 }
 0xd0e   :  { %v3608_v53 = vadd.f32 %v4178_v4, %v1786_v34  ;;  %v3036_v54 = vpop.f32.mrb[5].mxu1 }
 0xd10   :  { %3653 = vtanh.f32 %v3608_v53 }
 0xd1a   :  { %v3654_v42 = vpop.eup %3653 }
 0xd1b   :  { %3070 = vmatmul.mubr.f32.vlgmr.msra.gmra.mrb[6].mxu1 %v3654_v42 }
 0xdee   :  { %v1859_v46 = vpop.f32.mrb[6].mxu1 }
 0xdef   :  { %v3609_v49 = vadd.f32 %v4178_v4, %v1859_v46  ;;  %v3071_v52 = vpop.f32.mrb[7].mxu1 }
 0xdf1   :  { %3655 = vtanh.f32 %v3609_v49 }
 0xdfb   :  { %v3656_v8 = vpop.eup %3655 }
 0xdfc   :  { %v1872_v1 = vmul.f32 %v3656_v8, %v1903_v55 }
 0xdfe   :  { %1873 = vadd.xlane.f32.xlu0 %v1872_v1 }
 0xe8b   :  { %v1874_v13 = vpop.xlane.xlu0 %1873 }
 0xe8c   :  { %v1882_v16 = vadd.f32 %v1904_v10, %v1874_v13 }
 0xe8e   :  { %1884 = vst.msk [vmem:[%s4327_s7] sm:$0xff] %vm1883_vm3, %v1882_v16 }
 0xe8f   :  { %1889 = vsyncpa [#allocation6], 1 }
 0xe90   :  { %1890 = vsyncpa [#allocation8], 1 }

</bundles_post_ra>
